<compile_context>
chip_gen: v7x
topology: tpu7x:2x2x1
jax: 0.10.0
libtpu: 0.0.40
codegen_flags: <defaults>
</compile_context>

<pallas_src>
import functools

import jax
import jax.numpy as jnp
from jax.experimental import pallas as pl
from jax.experimental.pallas import tpu as pltpu

PAD = 128                      # padded feature width (sublane dim of activations)
DEFAULT_BLOCK_BATCH = 2048     # batch tile (lane dim), sweepable 1024-4096

INPUT_DIM = 3
HIDDEN_DIM = 70
MID_DIM = 30
OUTPUT_DIM = 2

# layer sizes of the nn.Sequential: (in, out, apply_silu)
LAYER_DEFS = [
    (INPUT_DIM, HIDDEN_DIM, True),
    (HIDDEN_DIM, HIDDEN_DIM, True),
    (HIDDEN_DIM, HIDDEN_DIM, True),
    (HIDDEN_DIM, HIDDEN_DIM, True),
    (HIDDEN_DIM, HIDDEN_DIM, True),
    (HIDDEN_DIM, MID_DIM, True),
    (MID_DIM, OUTPUT_DIM, False),
]
NUM_LAYERS = len(LAYER_DEFS)


def _round_up(n, m):
    return ((n + m - 1) // m) * m


def _cdiv(a, b):
    return -(-a // b)


def _pick_block_batch(batch, block_batch):
    """Lane-aligned batch tile; keep >=2 grid steps when possible (v7x megacore)."""
    block_batch = max(128, _round_up(block_batch, 128))
    bm = min(block_batch, _round_up(batch, 128))
    if bm > 128 and _cdiv(batch, bm) < 2:
        # Split into (at least) two steps so the "parallel" batch axis can be
        # sharded across both v7x TensorCores.  Harmless on v5e/v6e.
        bm = max(128, _round_up(_cdiv(batch, 2), 128))
    return bm


def _silu(h):
    # SiLU via a single tanh EUP op: x*sigmoid(x) == 0.5*x*(tanh(0.5*x) + 1).
    return 0.5 * h * (jnp.tanh(0.5 * h) + 1.0)


def _mlp_kernel(x_ref, t_ref, w0_ref, ws_ref, bs_ref, out_ref):
    """Feature-major MLP: activations are [PAD, BM], batch on the lane axis.

    x_ref:  [2, BM] f32          t_ref: [1, BM] f32
    w0_ref: [PAD, 3] f32         (layer-0 weight, PyTorch [out, in] layout)
    ws_ref: [6, PAD, PAD]        (layers 1..6 weights, [out, in] layout, f32/bf16)
    bs_ref: [PAD, NUM_LAYERS] f32 (biases as columns)
    out_ref:[2, BM] f32          (lane-dense output slab)
    """
    f32 = jnp.float32
    x = x_ref[...].astype(f32)           # [2, BM]
    t = t_ref[...].astype(f32)           # [1, BM]
    w0 = w0_ref[...]                     # [PAD, 3]
    b = bs_ref[...]                      # [PAD, NUM_LAYERS]

    # Layer 0 (3 -> 70): three VPU outer-product FMAs instead of a mostly-zero
    # K=128 MXU matmul.
    h = (w0[:, 0:1] * x[0:1, :]
         + w0[:, 1:2] * x[1:2, :]
         + w0[:, 2:3] * t[0:1, :]
         + b[:, 0:1])                    # [PAD, BM] f32
    h = _silu(h)

    # Layers 1..5 (Linear + SiLU) and layer 6 (Linear) on the MXU.
    # Weights are feature-major (W^T), so each layer is W^T @ h : [PAD,PAD]@[PAD,BM].
    for li in range(1, NUM_LAYERS):
        w = ws_ref[li - 1]                                   # [PAD, PAD]
        hh = h if w.dtype == f32 else h.astype(w.dtype)      # bf16 operands only
        h = jnp.dot(w, hh, preferred_element_type=f32) + b[:, li:li + 1]
        if li < NUM_LAYERS - 1:
            h = _silu(h)

    out_ref[...] = h[:OUTPUT_DIM, :].astype(out_ref.dtype)   # [2, BM], lane-dense


@functools.partial(jax.jit, static_argnames=("block_batch", "weight_dtype"))
def complex_network_forward(x, t, weights, biases, *,
                            block_batch=DEFAULT_BLOCK_BATCH,
                            weight_dtype=jnp.bfloat16):
    """x: [B, 2] f32, t: [B, 1] f32 -> complex64 [B]."""
    B = x.shape[0]

    # Feature-major (transposed) inputs: lane-dense [feat, B] blocks.
    # TODO(synk): produce x / t already transposed upstream to save this tiny pass.
    x_t = x.astype(jnp.float32).T                 # [2, B]
    t_t = t.astype(jnp.float32).reshape(1, -1)    # [1, B] (metadata-only reshape)

    # Layer-0 weight, feature-major [PAD, 3] (PyTorch [out, in] layout), f32 VPU path.
    w0 = jnp.zeros((PAD, INPUT_DIM), jnp.float32).at[:HIDDEN_DIM, :].set(
        weights[0].astype(jnp.float32).T)

    # Layers 1..6 weights as W^T = [out, in], zero-padded to [PAD, PAD], stacked
    # into one resident block (constant index map -> single DMA, stays in VMEM).
    ws = []
    for (din, dout, _), w in zip(LAYER_DEFS[1:], weights[1:]):
        ws.append(jnp.zeros((PAD, PAD), weight_dtype).at[:dout, :din].set(
            w.astype(weight_dtype).T))
    ws = jnp.stack(ws, axis=0)                                       # [6, PAD, PAD]

    # Biases as columns: [PAD, NUM_LAYERS] (column slice -> [PAD,1], no relayout).
    bs = jnp.zeros((PAD, NUM_LAYERS), jnp.float32)
    for li, ((_, dout, _), bb) in enumerate(zip(LAYER_DEFS, biases)):
        bs = bs.at[:dout, li].set(bb.astype(jnp.float32))

    bm = _pick_block_batch(B, block_batch)
    grid = (pl.cdiv(B, bm),)

    out = pl.pallas_call(
        _mlp_kernel,
        out_shape=jax.ShapeDtypeStruct((OUTPUT_DIM, B), jnp.float32),
        grid_spec=pltpu.PrefetchScalarGridSpec(
            num_scalar_prefetch=0,
            grid=grid,
            in_specs=[
                pl.BlockSpec((2, bm), lambda i: (0, i)),                 # x^T
                pl.BlockSpec((1, bm), lambda i: (0, i)),                 # t^T
                pl.BlockSpec((PAD, INPUT_DIM), lambda i: (0, 0)),        # w0 (resident)
                pl.BlockSpec((NUM_LAYERS - 1, PAD, PAD),
                             lambda i: (0, 0, 0)),                       # ws (resident)
                pl.BlockSpec((PAD, NUM_LAYERS), lambda i: (0, 0)),       # biases
            ],
            out_specs=pl.BlockSpec((OUTPUT_DIM, bm), lambda i: (0, i)),  # lane-dense
        ),
        compiler_params=pltpu.CompilerParams(
            dimension_semantics=("parallel",),
            vmem_limit_bytes=32 * 1024 * 1024,
        ),
    )(x_t, t_t, w0, ws, bs)

    return jax.lax.complex(out[0, :], out[1, :])                         # complex64 [B]


def init_params(key):
    """Deterministic kaiming_normal_(fan_in, leaky_relu) weights, zero biases."""
    negative_slope = 0.01
    gain = (2.0 / (1.0 + negative_slope ** 2)) ** 0.5
    weights, biases = [], []
    for din, dout, _ in LAYER_DEFS:
        key, sub = jax.random.split(key)
        std = gain / (din ** 0.5)
        # PyTorch Linear weight is [out, in]; store [in, out] so ref is y = x @ W.
        w = std * jax.random.normal(sub, (din, dout), jnp.float32)
        b = jnp.zeros((dout,), jnp.float32)
        weights.append(w)
        biases.append(b)
    return weights, biases


def _reference_forward(x, t, weights, biases):
    """Pure-JAX reference of the PyTorch forward (f32)."""
    h = jnp.concatenate([x, t], axis=1)
    for li, (_, _, use_silu) in enumerate(LAYER_DEFS):
        h = h @ weights[li] + biases[li]
        if use_silu:
            h = jax.nn.silu(h)
    return jax.lax.complex(h[:, 0], h[:, 1])


if __name__ == "__main__":
    key = jax.random.PRNGKey(0)
    kw, kx, kt = jax.random.split(key, 3)

    weights, biases = init_params(kw)

    # Small test shapes.
    B = 16
    x = jax.random.normal(kx, (B, 2), jnp.float32)    # spatial coords (2D)
    t = jax.random.normal(kt, (B, 1), jnp.float32)    # time
    ref = _reference_forward(x, t, weights, biases)

    # Default bf16-MXU path.
    out = jax.block_until_ready(complex_network_forward(x, t, weights, biases))
    assert out.shape == (B,) and out.dtype == jnp.complex64
    assert float(jnp.max(jnp.abs(out - ref))) < 1e-1

    # Exact-parity f32 path.
    out_f32 = jax.block_until_ready(
        complex_network_forward(x, t, weights, biases, weight_dtype=jnp.float32))
    assert out_f32.shape == (B,) and out_f32.dtype == jnp.complex64
    assert jnp.allclose(out_f32, ref, atol=1e-4, rtol=1e-4)

    # Ragged batch (not a multiple of 8/128) exercises the masked-writeback path.
    B2 = 13
    x2 = jax.random.normal(kx, (B2, 2), jnp.float32)
    t2 = jax.random.normal(kt, (B2, 1), jnp.float32)
    ref2 = _reference_forward(x2, t2, weights, biases)

    out2 = jax.block_until_ready(complex_network_forward(x2, t2, weights, biases))
    assert out2.shape == (B2,) and out2.dtype == jnp.complex64
    assert float(jnp.max(jnp.abs(out2 - ref2))) < 1e-1

    out2_f32 = jax.block_until_ready(
        complex_network_forward(x2, t2, weights, biases, weight_dtype=jnp.float32))
    assert jnp.allclose(out2_f32, ref2, atol=1e-4, rtol=1e-4)

    print("KERNEL_OK")
</pallas_src>

<mosaic_0001>
module attributes {stable_mosaic.version = 11 : i64} {
  func.func @_mlp_kernel(%arg0: i32, %arg1: memref<2x128xf32, #tpu.memory_space<vmem>>, %arg2: memref<1x128xf32, #tpu.memory_space<vmem>>, %arg3: memref<128x3xf32, #tpu.memory_space<vmem>>, %arg4: memref<6x128x128xbf16, #tpu.memory_space<vmem>>, %arg5: memref<128x7xf32, #tpu.memory_space<vmem>>, %arg6: memref<2x128xf32, #tpu.memory_space<vmem>>) attributes {dimension_semantics = [#tpu.dimension_semantics<parallel>], iteration_bounds = array<i64: 1>, scalar_prefetch = 0 : i64, scratch_operands = 0 : i64, tpu.core_type = #tpu.core_type<tc>, window_params = [{transform_indices = @transform_0, window_bounds = array<i64: 2, 128>}, {transform_indices = @transform_1, window_bounds = array<i64: 1, 128>}, {pipeline_mode = #tpu.pipeline_mode<synchronous>, transform_indices = @transform_2, window_bounds = array<i64: 128, 3>}, {pipeline_mode = #tpu.pipeline_mode<synchronous>, transform_indices = @transform_3, window_bounds = array<i64: 6, 128, 128>}, {pipeline_mode = #tpu.pipeline_mode<synchronous>, transform_indices = @transform_4, window_bounds = array<i64: 128, 7>}, {transform_indices = @transform_5, window_bounds = array<i64: 2, 128>}]} {
    %c0 = arith.constant 0 : index
    %c0_0 = arith.constant 0 : index
    %0 = vector.load %arg1[%c0, %c0_0] : memref<2x128xf32, #tpu.memory_space<vmem>>, vector<2x128xf32>
    %c0_1 = arith.constant 0 : index
    %c0_2 = arith.constant 0 : index
    %1 = vector.load %arg2[%c0_1, %c0_2] : memref<1x128xf32, #tpu.memory_space<vmem>>, vector<1x128xf32>
    %c0_3 = arith.constant 0 : index
    %c0_4 = arith.constant 0 : index
    %2 = vector.load %arg3[%c0_3, %c0_4] : memref<128x3xf32, #tpu.memory_space<vmem>>, vector<128x3xf32>
    %c0_5 = arith.constant 0 : index
    %c0_6 = arith.constant 0 : index
    %3 = vector.load %arg5[%c0_5, %c0_6] : memref<128x7xf32, #tpu.memory_space<vmem>>, vector<128x7xf32>
    %4 = vector.extract_strided_slice %2 {offsets = [0, 0], sizes = [128, 1], strides = [1, 1]} : vector<128x3xf32> to vector<128x1xf32>
    %5 = vector.extract_strided_slice %0 {offsets = [0, 0], sizes = [1, 128], strides = [1, 1]} : vector<2x128xf32> to vector<1x128xf32>
    %6 = vector.broadcast %4 : vector<128x1xf32> to vector<128x128xf32>
    %7 = vector.broadcast %5 : vector<1x128xf32> to vector<128x128xf32>
    %8 = arith.mulf %6, %7 : vector<128x128xf32>
    %9 = vector.extract_strided_slice %2 {offsets = [0, 1], sizes = [128, 1], strides = [1, 1]} : vector<128x3xf32> to vector<128x1xf32>
    %10 = vector.extract_strided_slice %0 {offsets = [1, 0], sizes = [1, 128], strides = [1, 1]} : vector<2x128xf32> to vector<1x128xf32>
    %11 = vector.broadcast %9 : vector<128x1xf32> to vector<128x128xf32>
    %12 = vector.broadcast %10 : vector<1x128xf32> to vector<128x128xf32>
    %13 = arith.mulf %11, %12 : vector<128x128xf32>
    %14 = arith.addf %8, %13 : vector<128x128xf32>
    %15 = vector.extract_strided_slice %2 {offsets = [0, 2], sizes = [128, 1], strides = [1, 1]} : vector<128x3xf32> to vector<128x1xf32>
    %16 = vector.broadcast %15 : vector<128x1xf32> to vector<128x128xf32>
    %17 = vector.broadcast %1 : vector<1x128xf32> to vector<128x128xf32>
    %18 = arith.mulf %16, %17 : vector<128x128xf32>
    %19 = arith.addf %14, %18 : vector<128x128xf32>
    %20 = vector.extract_strided_slice %3 {offsets = [0, 0], sizes = [128, 1], strides = [1, 1]} : vector<128x7xf32> to vector<128x1xf32>
    %21 = vector.broadcast %20 : vector<128x1xf32> to vector<128x128xf32>
    %22 = arith.addf %19, %21 : vector<128x128xf32>
    %cst = arith.constant 5.000000e-01 : f32
    %23 = vector.broadcast %cst : f32 to vector<128x128xf32>
    %24 = arith.mulf %23, %22 : vector<128x128xf32>
    %cst_7 = arith.constant 5.000000e-01 : f32
    %25 = vector.broadcast %cst_7 : f32 to vector<128x128xf32>
    %26 = arith.mulf %25, %22 : vector<128x128xf32>
    %27 = math.tanh %26 : vector<128x128xf32>
    %cst_8 = arith.constant 1.000000e+00 : f32
    %28 = vector.broadcast %cst_8 : f32 to vector<128x128xf32>
    %29 = arith.addf %27, %28 : vector<128x128xf32>
    %30 = arith.mulf %24, %29 : vector<128x128xf32>
    %c0_9 = arith.constant 0 : index
    %c0_10 = arith.constant 0 : index
    %c0_11 = arith.constant 0 : index
    %31 = vector.load %arg4[%c0_9, %c0_10, %c0_11] : memref<6x128x128xbf16, #tpu.memory_space<vmem>>, vector<1x128x128xbf16>
    %32 = vector.shape_cast %31 : vector<1x128x128xbf16> to vector<128x128xbf16>
    %33 = arith.truncf %30 : vector<128x128xf32> to vector<128x128xbf16>
    %cst_12 = arith.constant dense<0.000000e+00> : vector<128x128xf32>
    %34 = tpu.matmul %32, %33, %cst_12 {dimension_numbers = #tpu.dot_dimension_numbers<[1], [0], [0], [1], [0, 0, 1, 1], [], []>} : vector<128x128xbf16>, vector<128x128xbf16>, vector<128x128xf32> -> vector<128x128xf32>
    %35 = vector.extract_strided_slice %3 {offsets = [0, 1], sizes = [128, 1], strides = [1, 1]} : vector<128x7xf32> to vector<128x1xf32>
    %36 = vector.broadcast %35 : vector<128x1xf32> to vector<128x128xf32>
    %37 = arith.addf %34, %36 : vector<128x128xf32>
    %cst_13 = arith.constant 5.000000e-01 : f32
    %38 = vector.broadcast %cst_13 : f32 to vector<128x128xf32>
    %39 = arith.mulf %38, %37 : vector<128x128xf32>
    %cst_14 = arith.constant 5.000000e-01 : f32
    %40 = vector.broadcast %cst_14 : f32 to vector<128x128xf32>
    %41 = arith.mulf %40, %37 : vector<128x128xf32>
    %42 = math.tanh %41 : vector<128x128xf32>
    %cst_15 = arith.constant 1.000000e+00 : f32
    %43 = vector.broadcast %cst_15 : f32 to vector<128x128xf32>
    %44 = arith.addf %42, %43 : vector<128x128xf32>
    %45 = arith.mulf %39, %44 : vector<128x128xf32>
    %c1 = arith.constant 1 : index
    %c0_16 = arith.constant 0 : index
    %c0_17 = arith.constant 0 : index
    %46 = vector.load %arg4[%c1, %c0_16, %c0_17] : memref<6x128x128xbf16, #tpu.memory_space<vmem>>, vector<1x128x128xbf16>
    %47 = vector.shape_cast %46 : vector<1x128x128xbf16> to vector<128x128xbf16>
    %48 = arith.truncf %45 : vector<128x128xf32> to vector<128x128xbf16>
    %cst_18 = arith.constant dense<0.000000e+00> : vector<128x128xf32>
    %49 = tpu.matmul %47, %48, %cst_18 {dimension_numbers = #tpu.dot_dimension_numbers<[1], [0], [0], [1], [0, 0, 1, 1], [], []>} : vector<128x128xbf16>, vector<128x128xbf16>, vector<128x128xf32> -> vector<128x128xf32>
    %50 = vector.extract_strided_slice %3 {offsets = [0, 2], sizes = [128, 1], strides = [1, 1]} : vector<128x7xf32> to vector<128x1xf32>
    %51 = vector.broadcast %50 : vector<128x1xf32> to vector<128x128xf32>
    %52 = arith.addf %49, %51 : vector<128x128xf32>
    %cst_19 = arith.constant 5.000000e-01 : f32
    %53 = vector.broadcast %cst_19 : f32 to vector<128x128xf32>
    %54 = arith.mulf %53, %52 : vector<128x128xf32>
    %cst_20 = arith.constant 5.000000e-01 : f32
    %55 = vector.broadcast %cst_20 : f32 to vector<128x128xf32>
    %56 = arith.mulf %55, %52 : vector<128x128xf32>
    %57 = math.tanh %56 : vector<128x128xf32>
    %cst_21 = arith.constant 1.000000e+00 : f32
    %58 = vector.broadcast %cst_21 : f32 to vector<128x128xf32>
    %59 = arith.addf %57, %58 : vector<128x128xf32>
    %60 = arith.mulf %54, %59 : vector<128x128xf32>
    %c2 = arith.constant 2 : index
    %c0_22 = arith.constant 0 : index
    %c0_23 = arith.constant 0 : index
    %61 = vector.load %arg4[%c2, %c0_22, %c0_23] : memref<6x128x128xbf16, #tpu.memory_space<vmem>>, vector<1x128x128xbf16>
    %62 = vector.shape_cast %61 : vector<1x128x128xbf16> to vector<128x128xbf16>
    %63 = arith.truncf %60 : vector<128x128xf32> to vector<128x128xbf16>
    %cst_24 = arith.constant dense<0.000000e+00> : vector<128x128xf32>
    %64 = tpu.matmul %62, %63, %cst_24 {dimension_numbers = #tpu.dot_dimension_numbers<[1], [0], [0], [1], [0, 0, 1, 1], [], []>} : vector<128x128xbf16>, vector<128x128xbf16>, vector<128x128xf32> -> vector<128x128xf32>
    %65 = vector.extract_strided_slice %3 {offsets = [0, 3], sizes = [128, 1], strides = [1, 1]} : vector<128x7xf32> to vector<128x1xf32>
    %66 = vector.broadcast %65 : vector<128x1xf32> to vector<128x128xf32>
    %67 = arith.addf %64, %66 : vector<128x128xf32>
    %cst_25 = arith.constant 5.000000e-01 : f32
    %68 = vector.broadcast %cst_25 : f32 to vector<128x128xf32>
    %69 = arith.mulf %68, %67 : vector<128x128xf32>
    %cst_26 = arith.constant 5.000000e-01 : f32
    %70 = vector.broadcast %cst_26 : f32 to vector<128x128xf32>
    %71 = arith.mulf %70, %67 : vector<128x128xf32>
    %72 = math.tanh %71 : vector<128x128xf32>
    %cst_27 = arith.constant 1.000000e+00 : f32
    %73 = vector.broadcast %cst_27 : f32 to vector<128x128xf32>
    %74 = arith.addf %72, %73 : vector<128x128xf32>
    %75 = arith.mulf %69, %74 : vector<128x128xf32>
    %c3 = arith.constant 3 : index
    %c0_28 = arith.constant 0 : index
    %c0_29 = arith.constant 0 : index
    %76 = vector.load %arg4[%c3, %c0_28, %c0_29] : memref<6x128x128xbf16, #tpu.memory_space<vmem>>, vector<1x128x128xbf16>
    %77 = vector.shape_cast %76 : vector<1x128x128xbf16> to vector<128x128xbf16>
    %78 = arith.truncf %75 : vector<128x128xf32> to vector<128x128xbf16>
    %cst_30 = arith.constant dense<0.000000e+00> : vector<128x128xf32>
    %79 = tpu.matmul %77, %78, %cst_30 {dimension_numbers = #tpu.dot_dimension_numbers<[1], [0], [0], [1], [0, 0, 1, 1], [], []>} : vector<128x128xbf16>, vector<128x128xbf16>, vector<128x128xf32> -> vector<128x128xf32>
    %80 = vector.extract_strided_slice %3 {offsets = [0, 4], sizes = [128, 1], strides = [1, 1]} : vector<128x7xf32> to vector<128x1xf32>
    %81 = vector.broadcast %80 : vector<128x1xf32> to vector<128x128xf32>
    %82 = arith.addf %79, %81 : vector<128x128xf32>
    %cst_31 = arith.constant 5.000000e-01 : f32
    %83 = vector.broadcast %cst_31 : f32 to vector<128x128xf32>
    %84 = arith.mulf %83, %82 : vector<128x128xf32>
    %cst_32 = arith.constant 5.000000e-01 : f32
    %85 = vector.broadcast %cst_32 : f32 to vector<128x128xf32>
    %86 = arith.mulf %85, %82 : vector<128x128xf32>
    %87 = math.tanh %86 : vector<128x128xf32>
    %cst_33 = arith.constant 1.000000e+00 : f32
    %88 = vector.broadcast %cst_33 : f32 to vector<128x128xf32>
    %89 = arith.addf %87, %88 : vector<128x128xf32>
    %90 = arith.mulf %84, %89 : vector<128x128xf32>
    %c4 = arith.constant 4 : index
    %c0_34 = arith.constant 0 : index
    %c0_35 = arith.constant 0 : index
    %91 = vector.load %arg4[%c4, %c0_34, %c0_35] : memref<6x128x128xbf16, #tpu.memory_space<vmem>>, vector<1x128x128xbf16>
    %92 = vector.shape_cast %91 : vector<1x128x128xbf16> to vector<128x128xbf16>
    %93 = arith.truncf %90 : vector<128x128xf32> to vector<128x128xbf16>
    %cst_36 = arith.constant dense<0.000000e+00> : vector<128x128xf32>
    %94 = tpu.matmul %92, %93, %cst_36 {dimension_numbers = #tpu.dot_dimension_numbers<[1], [0], [0], [1], [0, 0, 1, 1], [], []>} : vector<128x128xbf16>, vector<128x128xbf16>, vector<128x128xf32> -> vector<128x128xf32>
    %95 = vector.extract_strided_slice %3 {offsets = [0, 5], sizes = [128, 1], strides = [1, 1]} : vector<128x7xf32> to vector<128x1xf32>
    %96 = vector.broadcast %95 : vector<128x1xf32> to vector<128x128xf32>
    %97 = arith.addf %94, %96 : vector<128x128xf32>
    %cst_37 = arith.constant 5.000000e-01 : f32
    %98 = vector.broadcast %cst_37 : f32 to vector<128x128xf32>
    %99 = arith.mulf %98, %97 : vector<128x128xf32>
    %cst_38 = arith.constant 5.000000e-01 : f32
    %100 = vector.broadcast %cst_38 : f32 to vector<128x128xf32>
    %101 = arith.mulf %100, %97 : vector<128x128xf32>
    %102 = math.tanh %101 : vector<128x128xf32>
    %cst_39 = arith.constant 1.000000e+00 : f32
    %103 = vector.broadcast %cst_39 : f32 to vector<128x128xf32>
    %104 = arith.addf %102, %103 : vector<128x128xf32>
    %105 = arith.mulf %99, %104 : vector<128x128xf32>
    %c5 = arith.constant 5 : index
    %c0_40 = arith.constant 0 : index
    %c0_41 = arith.constant 0 : index
    %106 = vector.load %arg4[%c5, %c0_40, %c0_41] : memref<6x128x128xbf16, #tpu.memory_space<vmem>>, vector<1x128x128xbf16>
    %107 = vector.shape_cast %106 : vector<1x128x128xbf16> to vector<128x128xbf16>
    %108 = arith.truncf %105 : vector<128x128xf32> to vector<128x128xbf16>
    %cst_42 = arith.constant dense<0.000000e+00> : vector<128x128xf32>
    %109 = tpu.matmul %107, %108, %cst_42 {dimension_numbers = #tpu.dot_dimension_numbers<[1], [0], [0], [1], [0, 0, 1, 1], [], []>} : vector<128x128xbf16>, vector<128x128xbf16>, vector<128x128xf32> -> vector<128x128xf32>
    %110 = vector.extract_strided_slice %3 {offsets = [0, 6], sizes = [128, 1], strides = [1, 1]} : vector<128x7xf32> to vector<128x1xf32>
    %111 = vector.broadcast %110 : vector<128x1xf32> to vector<128x128xf32>
    %112 = arith.addf %109, %111 : vector<128x128xf32>
    %113 = vector.extract_strided_slice %112 {offsets = [0, 0], sizes = [2, 128], strides = [1, 1]} : vector<128x128xf32> to vector<2x128xf32>
    %c0_43 = arith.constant 0 : index
    %c0_44 = arith.constant 0 : index
    %114 = vector.load %arg6[%c0_43, %c0_44] : memref<2x128xf32, #tpu.memory_space<vmem>>, vector<2x128xf32>
    tpu.vector_store %arg6[%c0_43, %c0_44], %113 {strides = array<i32>} : memref<2x128xf32, #tpu.memory_space<vmem>>, vector<2x128xf32>,
    return
  }
  func.func @transform_0(%arg0: i32) -> (i32, i32) {
    %c0_i32 = arith.constant 0 : i32
    %c0_i32_0 = arith.constant 0 : i32
    return %c0_i32, %arg0 : i32, i32
  }
  func.func @transform_1(%arg0: i32) -> (i32, i32) {
    %c0_i32 = arith.constant 0 : i32
    %c0_i32_0 = arith.constant 0 : i32
    return %c0_i32, %arg0 : i32, i32
  }
  func.func @transform_2(%arg0: i32) -> (i32, i32) {
    %c0_i32 = arith.constant 0 : i32
    %c0_i32_0 = arith.constant 0 : i32
    %c0_i32_1 = arith.constant 0 : i32
    return %c0_i32, %c0_i32_0 : i32, i32
  }
  func.func @transform_3(%arg0: i32) -> (i32, i32, i32) {
    %c0_i32 = arith.constant 0 : i32
    %c0_i32_0 = arith.constant 0 : i32
    %c0_i32_1 = arith.constant 0 : i32
    %c0_i32_2 = arith.constant 0 : i32
    return %c0_i32, %c0_i32_0, %c0_i32_1 : i32, i32, i32
  }
  func.func @transform_4(%arg0: i32) -> (i32, i32) {
    %c0_i32 = arith.constant 0 : i32
    %c0_i32_0 = arith.constant 0 : i32
    %c0_i32_1 = arith.constant 0 : i32
    return %c0_i32, %c0_i32_0 : i32, i32
  }
  func.func @transform_5(%arg0: i32) -> (i32, i32) {
    %c0_i32 = arith.constant 0 : i32
    %c0_i32_0 = arith.constant 0 : i32
    return %c0_i32, %arg0 : i32, i32
  }
}

</mosaic_0001>

<bundles_post_ra>
// kernel: custom-call
= control target key start
LH: loop header
LB: loop body
LE: loop exit
PB: predicated region body
PF: predicated region fallthrough
CT: control target
= control target key end

     0   :  { %s126_s0 = inlined_call_operand.vmem [shape: f32[16], index: 0, kind: input, shape index: {}]   ;;  %s127_s1 = inlined_call_operand.vmem [shape: f32[16], index: 1, kind: input, shape index: {}]   ;;  %s128_s2 = inlined_call_operand.hbm [shape: c64[16], index: 2, kind: output, shape index: {}]  }
   0x1   :  { %s87_s11 = scalar_lea.hbm %s128_s2, 16 }
   0x2   :  { %4 = vsyncpa [#allocation0], 0  ;;  %s5_s14 = sshll.u32 %s126_s0, 4  ;;  %s6_s14 = int_to_ptr.vmem [resolvable:$true] %s5_s14 }
   0x3   :  { %s18_s15 = scalar_lea.vmem %s6_s14, 16  ;;  %p23_p1 = scmp.lt.s32.totalorder %s6_s14, %s6_s14 }
   0x4   :  { %p19_p0 = scmp.ne.s32.totalorder %s6_s14, %s18_s15  ;;  %p24_p2 = scmp.lt.s32.totalorder %s18_s15, %s18_s15 }
   0x6   :  { %p25_p3 = por %p24_p2, %p23_p1 }
   0x8   :  { %p26_p4 = pnand %p25_p3, %p19_p0 }
   0xa   :  { %29 = shalt.err (!%p26_p4)  }
   0xb   :  { %p31_p5 = scmp.ne.s32.totalorder %s128_s2, %s87_s11  ;;  %s32_s0 = scalar_lea.hbm %s128_s2, 32 }
   0xc   :  { %p33_p6 = scmp.lt.u32.totalorder %s32_s0, %s87_s11  ;;  %p34_p7 = scmp.lt.u32.totalorder %s87_s11, %s128_s2 }
   0xe   :  { %p35_p8 = por %p34_p7, %p33_p6 }
  0x10   :  { %p36_p9 = pnand %p35_p8, %p31_p5 }
  0x12   :  { %39 = shalt.err (!%p36_p9)  }
  0x13   :  { %8 = dma.vmem_to_hbm [thread:$0]  %s6_s14, 16, %s128_s2, [#allocation0] }
  0x14   :  { %65 = dma.done.wait [#allocation0], 16  }
  0x15   :  { %66 = vsyncadd [#allocation0], 4294967280 }
  0x16   :  { %10 = vsyncpa [#allocation0], 1 }
  0x17   :  { %11 = vsyncpa [#allocation1], 0  ;;  %s12_s28 = sshll.u32 %s127_s1, 4  ;;  %s13_s28 = int_to_ptr.vmem [resolvable:$true] %s12_s28 }
  0x18   :  { %s40_s29 = scalar_lea.vmem %s13_s28, 16  ;;  %p45_p11 = scmp.lt.s32.totalorder %s13_s28, %s13_s28 }
  0x19   :  { %p41_p10 = scmp.ne.s32.totalorder %s13_s28, %s40_s29  ;;  %p46_p12 = scmp.lt.s32.totalorder %s40_s29, %s40_s29 }
  0x1b   :  { %p47_p13 = por %p46_p12, %p45_p11 }
  0x1d   :  { %p48_p0 = pnand %p47_p13, %p41_p10 }
  0x1f   :  { %51 = shalt.err (!%p48_p0)  }
  0x20   :  { %p53_p1 = scmp.ne.s32.totalorder %s87_s11, %s32_s0  ;;  %p56_p2 = scmp.lt.u32.totalorder %s32_s0, %s32_s0 }
  0x22   :  { %p57_p3 = por %p56_p2, %p34_p7 }
  0x24   :  { %p59_p4 = por %p57_p3, %p33_p6 }
  0x26   :  { %p60_p5 = pnand %p59_p4, %p53_p1 }
  0x28   :  { %63 = shalt.err (!%p60_p5)  }
  0x29   :  { %15 = dma.vmem_to_hbm [thread:$0]  %s13_s28, 16, %s87_s11, [#allocation1] }
  0x2a   :  { %67 = dma.done.wait [#allocation1], 16  }
  0x2b   :  { %68 = vsyncadd [#allocation1], 4294967280 }
  0x2c   :  { %17 = vsyncpa [#allocation1], 1 }

// kernel: complex_network_forward.1
= control target key start
LH: loop header
LB: loop body
LE: loop exit
PB: predicated region body
PF: predicated region fallthrough
CT: control target
= control target key end

     0   :  { %v2934_v0 = vmov 2   ;;  %v2935_v1 = vmov 1   ;;  %v2936_v7 = vmov 0   ;;  %v135_v44 = vlaneseq  ;;  %s3626_s2 = inlined_call_operand.vmem [shape: f32[128,3], index: 2, kind: input, shape index: {}]   ;;  %s3627_s4 = inlined_call_operand.vmem [shape: f32[128,7], index: 4, kind: input, shape index: {}]   ;;  %s3628_s0 = inlined_call_operand.vmem [shape: f32[2,16], index: 0, kind: input, shape index: {}]   ;;  %s3629_s1 = inlined_call_operand.vmem [shape: f32[1,16], index: 1, kind: input, shape index: {}]   ;;  %s3630_s3 = inlined_call_operand.vmem [shape: bf16[6,128,128], index: 3, kind: input, shape index: {}]   ;;  %s3631_s5 = inlined_call_operand.vmem [shape: f32[2,16], index: 5, kind: output, shape index: {}]  }
   0x1   :  { %2640 = vset.pattern.permute.xlu0 %v2934_v0  ;;  %2639 = vset.pattern.permute.xlu1 %v2935_v1  ;;  %v23_v2 = vld [vmem:[%s3626_s2] sm:$0xff]  ;;  %v25_v3 = vld [vmem:[%s3626_s2 + $0x10] sm:$0xff]  ;;  %v24_v4 = vld [vmem:[%s3626_s2 + $0x8] sm:$0xff] }
   0x2   :  { %256 = vperm.xlu0 %2640, %v23_v2   ;;  %156 = vperm.xlu1 %2639, %v23_v2   ;;  %v28_v5 = vld [vmem:[%s3626_s2 + $0x28] sm:$0xff]  ;;  %v27_v6 = vld [vmem:[%s3626_s2 + $0x20] sm:$0xff]  ;;  %v30_v8 = vld [vmem:[%s3626_s2 + $0x38] sm:$0xff]  ;;  %v136_v49 = vshrl.u32 %v135_v44, 7 }
   0x3   :  { %v2998_v9 = vld [vmem:[%s3626_s2 + $0x48] sm:$0xff]  ;;  %v26_v10 = vld [vmem:[%s3626_s2 + $0x18] sm:$0xff]  ;;  %v3025_v14 = vld [vmem:[%s3627_s4] sm:$0xff] }
   0x4   :  { %v3007_v11 = vld [vmem:[%s3626_s2 + $0x58] sm:$0xff]  ;;  %v3013_v12 = vld [vmem:[%s3626_s2 + $0x68] sm:$0xff]  ;;  %v29_v16 = vld [vmem:[%s3626_s2 + $0x30] sm:$0xff]  ;;  %v221_v52 = vsub.s32 1, %v136_v49  ;;  %v137_v54 = vsub.s32 0, %v136_v49 }
   0x5   :  { %v3020_v13 = vld [vmem:[%s3626_s2 + $0x78] sm:$0xff]  ;;  %v3035_v15 = vld [vmem:[%s3627_s4 + $0x8] sm:$0xff]  ;;  %v3045_v17 = vld [vmem:[%s3627_s4 + $0x10] sm:$0xff] }
   0x6   :  { %264 = vperm.xlu0 %2640, %v25_v3   ;;  %160 = vperm.xlu1 %2639, %v24_v4   ;;  %v3051_v18 = vld [vmem:[%s3627_s4 + $0x20] sm:$0xff]  ;;  %v3057_v19 = vld [vmem:[%s3627_s4 + $0x18] sm:$0xff]  ;;  %v3065_v20 = vld [vmem:[%s3627_s4 + $0x30] sm:$0xff] }
   0x7   :  { %v3073_v21 = vld [vmem:[%s3627_s4 + $0x40] sm:$0xff]  ;;  %v3081_v22 = vld [vmem:[%s3627_s4 + $0x50] sm:$0xff]  ;;  %v3086_v23 = vld [vmem:[%s3627_s4 + $0x28] sm:$0xff] }
   0x8   :  { %v31_v24 = vld [vmem:[%s3626_s2 + $0x40] sm:$0xff]  ;;  %v3105_v26 = vld [vmem:[%s3627_s4 + $0x78] sm:$0xff]  ;;  %v33_v28 = vld [vmem:[%s3626_s2 + $0x50] sm:$0xff] }
   0x9   :  { %v3098_v25 = vld [vmem:[%s3627_s4 + $0x60] sm:$0xff]  ;;  %v3115_v27 = vld [vmem:[%s3627_s4 + $0x38] sm:$0xff]  ;;  %v3132_v29 = vld [vmem:[%s3627_s4 + $0x70] sm:$0xff] }
   0xa   :  { %276 = vperm.xlu0 %2640, %v28_v5   ;;  %2641 = vset.pattern.permute.xlu1 %v2934_v0  ;;  %v3139_v30 = vld [vmem:[%s3627_s4 + $0x48] sm:$0xff]  ;;  %v35_v33 = vld [vmem:[%s3626_s2 + $0x60] sm:$0xff]  ;;  %v3166_v42 = vld [vmem:[%s3627_s4 + $0x58] sm:$0xff] }
   0xb   :  { %260 = vperm.xlu1 %2641, %v24_v4   ;;  %v3175_v46 = vld [vmem:[%s3627_s4 + $0x68] sm:$0xff]  ;;  %v37_v48 = vld [vmem:[%s3626_s2 + $0x70] sm:$0xff]  ;;  %v21_v53 = vld [vmem:[%s3628_s0] sm:$0x3] }
   0xc   :  { %v3193_v57 = vrot.slane %v21_v53, %v221_v52  ;;  %v3195_v58 = vrot.slane %v21_v53, %v137_v54  ;;  %v3200_v60 = vld [vmem:[%s3629_s1] ss:$0 sm:$0xff] }
   0xe   :  { %2648 = vset.pattern.permute.xlu0 %v2935_v1 }
   0xf   :  { %172 = vperm.xlu0 %2648, %v27_v6   ;;  %2642 = vset.pattern.permute.xlu1 %v2936_v7 }
  0x10   :  { %67 = vperm.xlu1 %2642, %v25_v3  }
  0x13   :  { %184 = vperm.xlu0 %2648, %v30_v8  }
  0x14   :  { %2643 = vset.pattern.permute.xlu1 %v2935_v1 }
  0x15   :  { %164 = vperm.xlu1 %2643, %v25_v3  }
  0x17   :  { %192 = vperm.xlu0 %2648, %v2998_v9  }
  0x19   :  { %168 = vperm.xlu1 %2643, %v26_v10  }
  0x1b   :  { %200 = vperm.xlu0 %2648, %v3007_v11  }
  0x1d   :  { %2644 = vset.pattern.permute.xlu1 %v2934_v0 }
  0x1e   :  { %268 = vperm.xlu1 %2644, %v26_v10  }
  0x1f   :  { %208 = vperm.xlu0 %2648, %v3013_v12  }
  0x22   :  { %2645 = vset.pattern.permute.xlu1 %v2936_v7 }
  0x23   :  { %216 = vperm.xlu0 %2648, %v3020_v13   ;;  %359 = vperm.xlu1 %2645, %v3025_v14  }
  0x27   :  { %2663 = vset.pattern.permute.xlu0 %v2936_v7  ;;  %77 = vperm.xlu1 %2645, %v27_v6  }
  0x28   :  { %57 = vperm.xlu0 %2663, %v23_v2  }
  0x2b   :  { %82 = vperm.xlu1 %2645, %v28_v5  }
  0x2c   :  { %62 = vperm.xlu0 %2663, %v24_v4  }
  0x2f   :  { %2646 = vset.pattern.permute.xlu1 %v2935_v1 }
  0x30   :  { %72 = vperm.xlu0 %2663, %v26_v10   ;;  %176 = vperm.xlu1 %2646, %v28_v5  }
  0x34   :  { %364 = vperm.xlu0 %2663, %v3035_v15   ;;  %2647 = vset.pattern.permute.xlu1 %v2934_v0 }
  0x35   :  { %272 = vperm.xlu1 %2647, %v27_v6  }
  0x38   :  { %87 = vperm.xlu0 %2663, %v29_v16  }
  0x39   :  { %2649 = vset.pattern.permute.xlu1 %v2936_v7 }
  0x3a   :  { %369 = vperm.xlu1 %2649, %v3045_v17  }
  0x3c   :  { %379 = vperm.xlu0 %2663, %v3051_v18  }
  0x3e   :  { %374 = vperm.xlu1 %2649, %v3057_v19  }
  0x40   :  { %102 = vperm.xlu0 %2663, %v2998_v9  }
  0x42   :  { %92 = vperm.xlu1 %2649, %v30_v8  }
  0x44   :  { %389 = vperm.xlu0 %2663, %v3065_v20  }
  0x46   :  { %2650 = vset.pattern.permute.xlu1 %v2935_v1 }
  0x47   :  { %180 = vperm.xlu1 %2650, %v29_v16  }
  0x48   :  { %112 = vperm.xlu0 %2663, %v3007_v11  }
  0x4b   :  { %2651 = vset.pattern.permute.xlu1 %v2934_v0 }
  0x4c   :  { %280 = vperm.xlu1 %2651, %v29_v16   ;;  %399 = vperm.xlu0 %2663, %v3073_v21  }
  0x50   :  { %284 = vperm.xlu1 %2651, %v30_v8   ;;  %122 = vperm.xlu0 %2663, %v3013_v12  }
  0x54   :  { %2652 = vset.pattern.permute.xlu1 %v2936_v7  ;;  %409 = vperm.xlu0 %2663, %v3081_v22  }
  0x55   :  { %384 = vperm.xlu1 %2652, %v3086_v23  }
  0x58   :  { %132 = vperm.xlu0 %2663, %v3020_v13  }
  0x59   :  { %97 = vperm.xlu1 %2652, %v31_v24  }
  0x5c   :  { %419 = vperm.xlu0 %2663, %v3098_v25  }
  0x5d   :  { %2653 = vset.pattern.permute.xlu1 %v2935_v1 }
  0x5e   :  { %188 = vperm.xlu1 %2653, %v31_v24  }
  0x60   :  { %434 = vperm.xlu0 %2663, %v3105_v26  }
  0x62   :  { %2654 = vset.pattern.permute.xlu1 %v2934_v0 }
  0x63   :  { %288 = vperm.xlu1 %2654, %v31_v24  }
  0x64   :  { %2667 = vset.pattern.permute.xlu0 %v2935_v1 }
  0x65   :  { %546 = vperm.xlu0 %2667, %v3035_v15  }
  0x67   :  { %292 = vperm.xlu1 %2654, %v2998_v9  }
  0x69   :  { %558 = vperm.xlu0 %2667, %v3051_v18  }
  0x6b   :  { %2655 = vset.pattern.permute.xlu1 %v2936_v7 }
  0x6c   :  { %394 = vperm.xlu1 %2655, %v3115_v27  }
  0x6d   :  { %566 = vperm.xlu0 %2667, %v3065_v20  }
  0x70   :  { %107 = vperm.xlu1 %2655, %v33_v28  }
  0x71   :  { %574 = vperm.xlu0 %2667, %v3073_v21  }
  0x74   :  { %2656 = vset.pattern.permute.xlu1 %v2935_v1 }
  0x75   :  { %196 = vperm.xlu1 %2656, %v33_v28   ;;  %582 = vperm.xlu0 %2667, %v3081_v22  }
  0x79   :  { %2657 = vset.pattern.permute.xlu1 %v2934_v0  ;;  %590 = vperm.xlu0 %2667, %v3098_v25  }
  0x7a   :  { %296 = vperm.xlu1 %2657, %v33_v28  }
  0x7d   :  { %598 = vperm.xlu0 %2667, %v3132_v29  }
  0x7e   :  { %300 = vperm.xlu1 %2657, %v3007_v11  }
  0x81   :  { %v157_v31 = vpop.permute.xlu1 %156  ;;  %v257_v32 = vpop.permute.xlu0 %256  ;;  %2668 = vset.pattern.permute.xlu0 %v2934_v0 }
  0x82   :  { %2658 = vset.pattern.permute.xlu1 %v2936_v7  ;;  %840 = vperm.xlu0 %2668, %v3025_v14   ;;  %v223_v62 = vmul.f32 %v3193_v57, %v157_v31  ;;  %v325_v63 = vmul.f32 %v3200_v60, %v257_v32 }
  0x83   :  { %404 = vperm.xlu1 %2658, %v3139_v30  }
  0x85   :  { %v161_v34 = vpop.permute.xlu1 %160  ;;  %v3148_v35 = vpop.permute.xlu0 %264 }
  0x86   :  { %852 = vperm.xlu0 %2668, %v3057_v19   ;;  %v224_v6 = vmul.f32 %v3193_v57, %v161_v34  ;;  %v327_v34 = vmul.f32 %v3200_v60, %v3148_v35 }
  0x87   :  { %117 = vperm.xlu1 %2658, %v35_v33  }
  0x89   :  { %v3151_v36 = vpop.permute.xlu0 %276 }
  0x8a   :  { %v261_v37 = vpop.permute.xlu1 %260  ;;  %860 = vperm.xlu0 %2668, %v3086_v23  }
  0x8b   :  { %2659 = vset.pattern.permute.xlu1 %v2935_v1  ;;  %v326_v24 = vmul.f32 %v3200_v60, %v261_v37 }
  0x8c   :  { %204 = vperm.xlu1 %2659, %v35_v33  }
  0x8e   :  { %v3155_v38 = vpop.permute.xlu0 %172  ;;  %868 = vperm.xlu0 %2668, %v3115_v27  }
  0x8f   :  { %v68_v39 = vpop.permute.xlu1 %67 }
  0x90   :  { %2660 = vset.pattern.permute.xlu1 %v2934_v0  ;;  %v141_v32 = vmul.f32 %v3195_v58, %v68_v39 }
  0x91   :  { %304 = vperm.xlu1 %2660, %v35_v33  }
  0x92   :  { %v3159_v40 = vpop.permute.xlu0 %184  ;;  %876 = vperm.xlu0 %2668, %v3139_v30  }
  0x94   :  { %v165_v41 = vpop.permute.xlu1 %164 }
  0x95   :  { %308 = vperm.xlu1 %2660, %v3013_v12   ;;  %v225_v28 = vmul.f32 %v3193_v57, %v165_v41 }
  0x96   :  { %v3168_v43 = vpop.permute.xlu0 %192  ;;  %884 = vperm.xlu0 %2668, %v3166_v42  }
  0x97   :  { %v241_v44 = vadd.f32 %v225_v28, %v141_v32 }
  0x98   :  { %v169_v45 = vpop.permute.xlu1 %168 }
  0x99   :  { %2661 = vset.pattern.permute.xlu1 %v2936_v7  ;;  %v343_v53 = vadd.f32 %v327_v34, %v241_v44 }
  0x9a   :  { %414 = vperm.xlu1 %2661, %v3166_v42   ;;  %v3178_v47 = vpop.permute.xlu0 %200  ;;  %892 = vperm.xlu0 %2668, %v3175_v46  }
  0x9d   :  { %v269_v50 = vpop.permute.xlu1 %268 }
  0x9e   :  { %127 = vperm.xlu1 %2661, %v37_v48   ;;  %v3184_v51 = vpop.permute.xlu0 %208  ;;  %900 = vperm.xlu0 %2668, %v3105_v26   ;;  %v328_v35 = vmul.f32 %v3200_v60, %v269_v50 }
  0xa2   :  { %2662 = vset.pattern.permute.xlu1 %v2935_v1  ;;  %v360_v55 = vpop.permute.xlu1 %359  ;;  %v3191_v56 = vpop.permute.xlu0 %216 }
  0xa3   :  { %212 = vperm.xlu1 %2662, %v37_v48  }
  0xa6   :  { %v78_v59 = vpop.permute.xlu1 %77 }
  0xa7   :  { %v58_v61 = vpop.permute.xlu0 %57  ;;  %2664 = vset.pattern.permute.xlu1 %v2934_v0  ;;  %v143_v50 = vmul.f32 %v3195_v58, %v78_v59 }
  0xa8   :  { %v139_v2 = vmul.f32 %v3195_v58, %v58_v61  ;;  %312 = vperm.xlu1 %2664, %v37_v48  }
  0xaa   :  { %v239_v3 = vadd.f32 %v223_v62, %v139_v2  ;;  %v3206_v4 = vpop.permute.xlu1 %82 }
  0xab   :  { %v63_v5 = vpop.permute.xlu0 %62 }
  0xac   :  { %v341_v8 = vadd.f32 %v325_v63, %v239_v3  ;;  %v140_v9 = vmul.f32 %v3195_v58, %v63_v5  ;;  %316 = vperm.xlu1 %2664, %v3020_v13  }
  0xae   :  { %v240_v10 = vadd.f32 %v224_v6, %v140_v9  ;;  %v437_v11 = vadd.f32 %v360_v55, %v341_v8 }
  0xaf   :  { %v73_v12 = vpop.permute.xlu0 %72  ;;  %v177_v16 = vpop.permute.xlu1 %176 }
  0xb0   :  { %2665 = vset.pattern.permute.xlu1 %v2936_v7  ;;  %v453_v31 = vmul.f32 0.5, %v437_v11  ;;  %v342_v33 = vadd.f32 %v326_v24, %v240_v10  ;;  %v142_v48 = vmul.f32 %v3195_v58, %v73_v12  ;;  %v226_v7 = vmul.f32 %v3193_v57, %v169_v45 }
  0xb1   :  { %424 = vperm.xlu1 %2665, %v3175_v46  }
  0xb2   :  { %2725 = vtanh.f32 %v453_v31  ;;  %v242_v41 = vadd.f32 %v226_v7, %v142_v48 }
  0xb3   :  { %v365_v13 = vpop.permute.xlu0 %364 }
  0xb4   :  { %v438_v49 = vadd.f32 %v365_v13, %v342_v33  ;;  %v273_v52 = vpop.permute.xlu1 %272  ;;  %v344_v61 = vadd.f32 %v328_v35, %v242_v41 }
  0xb5   :  { %429 = vperm.xlu1 %2665, %v3132_v29   ;;  %v329_v9 = vmul.f32 %v3200_v60, %v273_v52 }
  0xb6   :  { %v454_v37 = vmul.f32 0.5, %v438_v49 }
  0xb7   :  { %v88_v3 = vpop.permute.xlu0 %87 }
  0xb8   :  { %2727 = vtanh.f32 %v454_v37  ;;  %v145_v35 = vmul.f32 %v3195_v58, %v88_v3 }
  0xb9   :  { %v370_v39 = vpop.permute.xlu1 %369  ;;  %2666 = vset.pattern.permute.xlu1 %v2935_v1  ;;  %v227_v1 = vmul.f32 %v3193_v57, %v3155_v38 }
  0xba   :  { %v439_v54 = vadd.f32 %v370_v39, %v343_v53  ;;  %542 = vperm.xlu1 %2666, %v3025_v14  }
  0xbb   :  { %v243_v12 = vadd.f32 %v227_v1, %v143_v50  ;;  %v380_v28 = vpop.permute.xlu0 %379  ;;  %v230_v1 = vmul.f32 %v3193_v57, %v3159_v40 }
  0xbc   :  { %v455_v55 = vmul.f32 0.5, %v439_v54  ;;  %v2726_v63 = vpop.eup %2725 }
  0xbd   :  { %v375_v62 = vpop.permute.xlu1 %374  ;;  %v485_v6 = vadd.f32 1.0, %v2726_v63  ;;  %v345_v34 = vadd.f32 %v329_v9, %v243_v12 }
  0xbe   :  { %2729 = vtanh.f32 %v455_v55  ;;  %v440_v2 = vadd.f32 %v375_v62, %v344_v61  ;;  %550 = vperm.xlu1 %2666, %v3045_v17  }
  0xbf   :  { %v501_v10 = vmul.f32 %v485_v6, %v453_v31  ;;  %v441_v38 = vadd.f32 %v380_v28, %v345_v34  ;;  %v2677_v31 = vld [vmem:[%s3630_s3] sm:$0xff]  }
  0xc0   :  { %v456_v45 = vmul.f32 0.5, %v440_v2  ;;  %2456 = vmatprep.mubr.bf16.mxu0 %v2677_v31 }
  0xc1   :  { %v3225_v5 = vpop.permute.xlu1 %92  ;;  %v457_v49 = vmul.f32 0.5, %v441_v38 }
  0xc2   :  { %v2728_v8 = vpop.eup %2727  ;;  %2731 = vtanh.f32 %v456_v45  ;;  %554 = vperm.xlu1 %2666, %v3057_v19   ;;  %v228_v19 = vmul.f32 %v3193_v57, %v177_v16 }
  0xc3   :  { %v486_v14 = vadd.f32 1.0, %v2728_v8  ;;  %2733 = vtanh.f32 %v457_v49 }
  0xc5   :  { %v502_v11 = vmul.f32 %v486_v14, %v454_v37 }
  0xc6   :  { %v181_v24 = vpop.permute.xlu1 %180  ;;  %562 = vperm.xlu1 %2666, %v3086_v23   ;;  %v144_v23 = vmul.f32 %v3195_v58, %v3206_v4 }
  0xc7   :  { %v533_v32 = vpack.c.bf16 %v502_v11, %v501_v10 }
  0xc8   :  { %v2730_v33 = vpop.eup %2729  ;;  %v244_v52 = vadd.f32 %v228_v19, %v144_v23 }
  0xc9   :  { %2440 = vmatprep.subr.bf16.mxu0 %v533_v32  ;;  %v487_v59 = vadd.f32 1.0, %v2730_v33 }
  0xca   :  { %2441 = vmatpush3.bf16.msra.mxu0 %v533_v32  ;;  %570 = vperm.xlu1 %2666, %v3115_v27   ;;  %v330_v27 = vmul.f32 %v3200_v60, %v3151_v36  ;;  %v103_v36 = vpop.permute.xlu0 %102 }
  0xcb   :  { %v281_v13 = vpop.permute.xlu1 %280  ;;  %v503_v16 = vmul.f32 %v487_v59, %v455_v55 }
  0xcc   :  { %v2732_v44 = vpop.eup %2731  ;;  %v346_v53 = vadd.f32 %v330_v27, %v244_v52  ;;  %v331_v55 = vmul.f32 %v3200_v60, %v281_v13  ;;  %v232_v13 = vmul.f32 %v3193_v57, %v3168_v43 }
  0xcd   :  { %v488_v48 = vadd.f32 1.0, %v2732_v44 }
  0xce   :  { %578 = vperm.xlu1 %2666, %v3139_v30   ;;  %v229_v30 = vmul.f32 %v3193_v57, %v181_v24  ;;  %v390_v2 = vpop.permute.xlu0 %389 }
  0xcf   :  { %v504_v7 = vmul.f32 %v488_v48, %v456_v45  ;;  %v285_v37 = vpop.permute.xlu1 %284 }
  0xd0   :  { %v245_v62 = vadd.f32 %v229_v30, %v145_v35  ;;  %v332_v10 = vmul.f32 %v3200_v60, %v285_v37 }
  0xd1   :  { %v534_v41 = vpack.c.bf16 %v504_v7, %v503_v16 }
  0xd2   :  { %586 = vperm.xlu1 %2666, %v3166_v42   ;;  %v2734_v42 = vpop.eup %2733  ;;  %v347_v63 = vadd.f32 %v331_v55, %v245_v62  ;;  %v113_v34 = vpop.permute.xlu0 %112 }
  0xd3   :  { %2442 = vmatprep.subr.bf16.mxu0 %v534_v41  ;;  %v489_v3 = vadd.f32 1.0, %v2734_v42 }
  0xd4   :  { %v385_v39 = vpop.permute.xlu1 %384  ;;  %2443 = vmatpush3.bf16.msra.mxu0 %v534_v41  ;;  %v443_v6 = vadd.f32 %v390_v2, %v347_v63 }
  0xd5   :  { %v442_v4 = vadd.f32 %v385_v39, %v346_v53  ;;  %v505_v9 = vmul.f32 %v489_v3, %v457_v49 }
  0xd6   :  { %594 = vperm.xlu1 %2666, %v3175_v46   ;;  %v459_v50 = vmul.f32 0.5, %v443_v6  ;;  %v400_v48 = vpop.permute.xlu0 %399  ;;  %v234_v6 = vmul.f32 %v3193_v57, %v3178_v47 }
  0xd7   :  { %v458_v54 = vmul.f32 0.5, %v442_v4 }
  0xd8   :  { %v98_v61 = vpop.permute.xlu1 %97 }
  0xd9   :  { %2735 = vtanh.f32 %v458_v54  ;;  %v147_v33 = vmul.f32 %v3195_v58, %v98_v61 }
  0xda   :  { %602 = vperm.xlu1 %2666, %v3105_v26   ;;  %v146_v26 = vmul.f32 %v3195_v58, %v3225_v5  ;;  %2737 = vtanh.f32 %v459_v50 }
  0xdd   :  { %v189_v45 = vpop.permute.xlu1 %188 }
  0xde   :  { %2669 = vset.pattern.permute.xlu1 %v2934_v0  ;;  %v231_v32 = vmul.f32 %v3193_v57, %v189_v45 }
  0xdf   :  { %844 = vperm.xlu1 %2669, %v3035_v15   ;;  %v246_v15 = vadd.f32 %v230_v1, %v146_v26 }
  0xe0   :  { %v247_v19 = vadd.f32 %v231_v32, %v147_v33 }
  0xe1   :  { %v348_v24 = vadd.f32 %v332_v10, %v246_v15 }
  0xe2   :  { %v289_v46 = vpop.permute.xlu1 %288 }
  0xe3   :  { %v2736_v8 = vpop.eup %2735  ;;  %848 = vperm.xlu1 %2669, %v3045_v17  }
  0xe4   :  { %v490_v14 = vadd.f32 1.0, %v2736_v8  ;;  %v2738_v59 = vpop.eup %2737 }
  0xe5   :  { %v491_v31 = vadd.f32 1.0, %v2738_v59 }
  0xe6   :  { %v506_v0 = vmul.f32 %v490_v14, %v458_v54  ;;  %v293_v11 = vpop.permute.xlu1 %292  ;;  %v123_v54 = vpop.permute.xlu0 %122 }
  0xe7   :  { %856 = vperm.xlu1 %2669, %v3051_v18   ;;  %v333_v18 = vmul.f32 %v3200_v60, %v289_v46  ;;  %v507_v52 = vmul.f32 %v491_v31, %v459_v50  ;;  %v334_v16 = vmul.f32 %v3200_v60, %v293_v11  ;;  %v150_v46 = vmul.f32 %v3195_v58, %v113_v34 }
  0xe8   :  { %v535_v12 = vpack.c.bf16 %v506_v0, %v505_v9 }
  0xe9   :  { %v250_v10 = vadd.f32 %v234_v6, %v150_v46 }
  0xea   :  { %2444 = vmatprep.subr.bf16.mxu0 %v535_v12  ;;  %v410_v3 = vpop.permute.xlu0 %409 }
  0xeb   :  { %v395_v17 = vpop.permute.xlu1 %394  ;;  %2445 = vmatpush3.bf16.msra.mxu0 %v535_v12  ;;  %864 = vperm.xlu1 %2669, %v3065_v20   ;;  %v349_v20 = vadd.f32 %v333_v18, %v247_v19 }
  0xec   :  { %v444_v40 = vadd.f32 %v395_v17, %v348_v24 }
  0xed   :  { %v445_v49 = vadd.f32 %v400_v48, %v349_v20 }
  0xee   :  { %v460_v5 = vmul.f32 0.5, %v444_v40  ;;  %v133_v34 = vpop.permute.xlu0 %132 }
  0xef   :  { %v108_v28 = vpop.permute.xlu1 %107  ;;  %872 = vperm.xlu1 %2669, %v3073_v21   ;;  %v148_v21 = vmul.f32 %v3195_v58, %v103_v36 }
  0xf0   :  { %2739 = vtanh.f32 %v460_v5 }
  0xf2   :  { %v420_v31 = vpop.permute.xlu0 %419 }
  0xf3   :  { %880 = vperm.xlu1 %2669, %v3081_v22   ;;  %v248_v22 = vadd.f32 %v232_v13, %v148_v21  ;;  %v238_v13 = vmul.f32 %v3193_v57, %v3191_v56  ;;  %v154_v21 = vmul.f32 %v3195_v58, %v133_v34 }
  0xf4   :  { %v197_v38 = vpop.permute.xlu1 %196 }
  0xf5   :  { %v350_v43 = vadd.f32 %v334_v16, %v248_v22  ;;  %v233_v30 = vmul.f32 %v3193_v57, %v197_v38 }
  0xf7   :  { %888 = vperm.xlu1 %2669, %v3098_v25   ;;  %v461_v25 = vmul.f32 0.5, %v445_v49 }
  0xf9   :  { %v297_v44 = vpop.permute.xlu1 %296  ;;  %2741 = vtanh.f32 %v461_v25 }
  0xfa   :  { %v2740_v23 = vpop.eup %2739  ;;  %v335_v36 = vmul.f32 %v3200_v60, %v297_v44  ;;  %v236_v44 = vmul.f32 %v3193_v57, %v3184_v51 }
  0xfb   :  { %v492_v27 = vadd.f32 1.0, %v2740_v23  ;;  %896 = vperm.xlu1 %2669, %v3132_v29   ;;  %v149_v29 = vmul.f32 %v3195_v58, %v108_v28  ;;  %v152_v23 = vmul.f32 %v3195_v58, %v123_v54 }
  0xfd   :  { %v508_v7 = vmul.f32 %v492_v27, %v460_v5  ;;  %v301_v37 = vpop.permute.xlu1 %300  ;;  %v249_v61 = vadd.f32 %v233_v30, %v149_v29 }
  0xfe   :  { %v336_v26 = vmul.f32 %v3200_v60, %v301_v37 }
  0xff   :  { %v536_v41 = vpack.c.bf16 %v508_v7, %v507_v52  ;;  %v351_v42 = vadd.f32 %v335_v36, %v249_v61  ;;  %v254_v7 = vadd.f32 %v238_v13, %v154_v21 }
 0x100   :  { %v352_v15 = vadd.f32 %v336_v26, %v250_v10 }
 0x101   :  { %2446 = vmatprep.subr.bf16.mxu0 %v536_v41  ;;  %v447_v8 = vadd.f32 %v410_v3, %v351_v42 }
 0x102   :  { %v405_v53 = vpop.permute.xlu1 %404  ;;  %2447 = vmatpush3.bf16.msra.mxu0 %v536_v41 }
 0x103   :  { %v446_v39 = vadd.f32 %v405_v53, %v350_v43  ;;  %v2742_v62 = vpop.eup %2741  ;;  %v463_v0 = vmul.f32 0.5, %v447_v8 }
 0x104   :  { %v493_v2 = vadd.f32 1.0, %v2742_v62 }
 0x105   :  { %v462_v4 = vmul.f32 0.5, %v446_v39  ;;  %v435_v39 = vpop.permute.xlu0 %434 }
 0x106   :  { %v118_v35 = vpop.permute.xlu1 %117  ;;  %v509_v9 = vmul.f32 %v493_v2, %v461_v25  ;;  %v252_v25 = vadd.f32 %v236_v44, %v152_v23 }
 0x107   :  { %2743 = vtanh.f32 %v462_v4  ;;  %v151_v5 = vmul.f32 %v3195_v58, %v118_v35 }
 0x108   :  { %2745 = vtanh.f32 %v463_v0 }
 0x10b   :  { %v205_v55 = vpop.permute.xlu1 %204 }
 0x10c   :  { %v235_v40 = vmul.f32 %v3193_v57, %v205_v55 }
 0x10e   :  { %v251_v33 = vadd.f32 %v235_v40, %v151_v5  ;;  %v2685_v40 = vld [vmem:[%s3630_s3 + $0x40] sm:$0xff]  }
 0x10f   :  { %2488 = vmatprep.mubr.bf16.mxu1 %v2685_v40 }
 0x110   :  { %v305_v63 = vpop.permute.xlu1 %304 }
 0x111   :  { %v2744_v45 = vpop.eup %2743  ;;  %v337_v28 = vmul.f32 %v3200_v60, %v305_v63 }
 0x112   :  { %v494_v1 = vadd.f32 1.0, %v2744_v45  ;;  %v2746_v18 = vpop.eup %2745 }
 0x113   :  { %v353_v38 = vadd.f32 %v337_v28, %v251_v33  ;;  %v495_v59 = vadd.f32 1.0, %v2746_v18 }
 0x114   :  { %v510_v50 = vmul.f32 %v494_v1, %v462_v4  ;;  %v309_v14 = vpop.permute.xlu1 %308 }
 0x115   :  { %v449_v48 = vadd.f32 %v420_v31, %v353_v38  ;;  %v338_v27 = vmul.f32 %v3200_v60, %v309_v14  ;;  %v511_v16 = vmul.f32 %v495_v59, %v463_v0  ;;  %v2678_v0 = vld [vmem:[%s3630_s3 + $0x8] sm:$0xff]  }
 0x116   :  { %v537_v11 = vpack.c.bf16 %v510_v50, %v509_v9 }
 0x117   :  { %v465_v56 = vmul.f32 0.5, %v449_v48  ;;  %v354_v35 = vadd.f32 %v338_v27, %v252_v25 }
 0x118   :  { %2448 = vmatprep.subr.bf16.mxu0 %v537_v11 }
 0x119   :  { %v415_v12 = vpop.permute.xlu1 %414  ;;  %2449 = vmatpush3.bf16.msra.mxu0 %v537_v11  ;;  %v2679_v11 = vld [vmem:[%s3630_s3 + $0x10] sm:$0xff]  }
 0x11a   :  { %v448_v24 = vadd.f32 %v415_v12, %v352_v15  ;;  %v2680_v15 = vld [vmem:[%s3630_s3 + $0x18] sm:$0xff]   ;;  %v2681_v12 = vld [vmem:[%s3630_s3 + $0x20] sm:$0xff]  }
 0x11c   :  { %v464_v17 = vmul.f32 0.5, %v448_v24  ;;  %v2682_v24 = vld [vmem:[%s3630_s3 + $0x28] sm:$0xff]  }
 0x11d   :  { %v128_v47 = vpop.permute.xlu1 %127 }
 0x11e   :  { %2747 = vtanh.f32 %v464_v17  ;;  %v153_v51 = vmul.f32 %v3195_v58, %v128_v47  ;;  %v2684_v47 = vld [vmem:[%s3630_s3 + $0x38] sm:$0xff]  }
 0x11f   :  { %2749 = vtanh.f32 %v465_v56 }
 0x122   :  { %v213_v32 = vpop.permute.xlu1 %212 }
 0x123   :  { %v237_v41 = vmul.f32 %v3193_v57, %v213_v32  ;;  %v547_v32 = vpop.permute.xlu0 %546 }
 0x125   :  { %v253_v36 = vadd.f32 %v237_v41, %v153_v51 }
 0x127   :  { %v313_v19 = vpop.permute.xlu1 %312  ;;  %v559_v18 = vpop.permute.xlu0 %558 }
 0x128   :  { %v2748_v20 = vpop.eup %2747  ;;  %v339_v4 = vmul.f32 %v3200_v60, %v313_v19 }
 0x129   :  { %v496_v49 = vadd.f32 1.0, %v2748_v20  ;;  %v2750_v58 = vpop.eup %2749 }
 0x12a   :  { %v355_v62 = vadd.f32 %v339_v4, %v253_v36 }
 0x12b   :  { %v512_v22 = vmul.f32 %v496_v49, %v464_v17  ;;  %v317_v52 = vpop.permute.xlu1 %316  ;;  %v2683_v17 = vld [vmem:[%s3630_s3 + $0x30] sm:$0xff]   ;;  %v567_v38 = vpop.permute.xlu0 %566 }
 0x12c   :  { %v340_v37 = vmul.f32 %v3200_v60, %v317_v52  ;;  %v497_v60 = vadd.f32 1.0, %v2750_v58 }
 0x12d   :  { %v538_v43 = vpack.c.bf16 %v512_v22, %v511_v16 }
 0x12e   :  { %v356_v53 = vadd.f32 %v340_v37, %v254_v7  ;;  %v513_v46 = vmul.f32 %v497_v60, %v465_v56 }
 0x12f   :  { %2450 = vmatprep.subr.bf16.mxu0 %v538_v43  ;;  %v575_v52 = vpop.permute.xlu0 %574 }
 0x130   :  { %v452_v30 = vadd.f32 %v435_v39, %v356_v53  ;;  %v425_v29 = vpop.permute.xlu1 %424  ;;  %2451 = vmatpush3.bf16.msra.mxu0 %v538_v43 }
 0x131   :  { %v450_v54 = vadd.f32 %v425_v29, %v354_v35 }
 0x132   :  { %v468_v55 = vmul.f32 0.5, %v452_v30 }
 0x133   :  { %v466_v61 = vmul.f32 0.5, %v450_v54  ;;  %v583_v4 = vpop.permute.xlu0 %582 }
 0x134   :  { %2751 = vtanh.f32 %v468_v55  ;;  %v430_v57 = vpop.permute.xlu1 %429 }
 0x135   :  { %2753 = vtanh.f32 %v466_v61  ;;  %v451_v42 = vadd.f32 %v430_v57, %v355_v62 }
 0x137   :  { %v467_v63 = vmul.f32 0.5, %v451_v42 }
 0x139   :  { %2755 = vtanh.f32 %v467_v63  ;;  %v543_v5 = vpop.permute.xlu1 %542 }
 0x13d   :  { %v551_v28 = vpop.permute.xlu1 %550 }
 0x13e   :  { %v2752_v2 = vpop.eup %2751 }
 0x13f   :  { %v2754_v45 = vpop.eup %2753  ;;  %v500_v8 = vadd.f32 1.0, %v2752_v2 }
 0x140   :  { %v498_v3 = vadd.f32 1.0, %v2754_v45  ;;  %v591_v45 = vpop.permute.xlu0 %590 }
 0x141   :  { %v516_v9 = vmul.f32 %v500_v8, %v468_v55  ;;  %v555_v33 = vpop.permute.xlu1 %554 }
 0x142   :  { %v514_v6 = vmul.f32 %v498_v3, %v466_v61 }
 0x143   :  { %v2756_v1 = vpop.eup %2755 }
 0x144   :  { %v499_v26 = vadd.f32 1.0, %v2756_v1  ;;  %v539_v50 = vpack.c.bf16 %v514_v6, %v513_v46 }
 0x145   :  { %v563_v34 = vpop.permute.xlu1 %562 }
 0x146   :  { %v515_v14 = vmul.f32 %v499_v26, %v467_v63  ;;  %2452 = vmatprep.subr.bf16.mxu0 %v539_v50 }
 0x147   :  { %2453 = vmatpush3.bf16.msra.mxu0 %v539_v50 }
 0x148   :  { %v540_v10 = vpack.c.bf16 %v516_v9, %v515_v14 }
 0x149   :  { %v571_v13 = vpop.permute.xlu1 %570 }
 0x14a   :  { %2454 = vmatprep.subr.bf16.mxu0 %v540_v10 }
 0x14b   :  { %2455 = vmatpush3.bf16.msra.mxu0 %v540_v10 }
 0x14d   :  { %v579_v7 = vpop.permute.xlu1 %578 }
 0x14e   :  { %2457 = vmatmul.mubr.bf16.vlgmr.msra.gmra.mrb[0].mxu0 %v2678_v0 }
 0x14f   :  { %2460 = vmatprep.mubr.bf16.mxu0 %v2679_v11 }
 0x151   :  { %v587_v36 = vpop.permute.xlu1 %586 }
 0x155   :  { %v595_v14 = vpop.permute.xlu1 %594 }
 0x156   :  { %2461 = vmatmul.mubr.bf16.gmra.mrb[4].mxu0 %v2680_v15 }
 0x157   :  { %2464 = vmatprep.mubr.bf16.mxu0 %v2681_v12 }
 0x15e   :  { %2465 = vmatmul.mubr.bf16.gmra.mrb[8].mxu0 %v2682_v24 }
 0x15f   :  { %2468 = vmatprep.mubr.bf16.mxu0 %v2683_v17 }
 0x166   :  { %2469 = vmatmul.mubr.bf16.gmra.mrb[12].mxu0 %v2684_v47 }
 0x221   :  { %v2458_v19 = vpop.f32.mrb[0].mxu0 }
 0x222   :  { %v696_v59 = vadd.f32 %v2458_v19, %v551_v28  ;;  %v687_v20 = vpop.f32.mrb[1].mxu0 }
 0x223   :  { %v688_v21 = vadd.f32 %v687_v20, %v543_v5  ;;  %v2459_v31 = vpop.f32.mrb[2].mxu0 }
 0x224   :  { %v752_v44 = vmul.f32 0.5, %v696_v59  ;;  %v699_v23 = vadd.f32 %v2459_v31, %v555_v33  ;;  %v690_v48 = vpop.f32.mrb[3].mxu0 }
 0x225   :  { %v750_v49 = vmul.f32 0.5, %v688_v21  ;;  %v691_v27 = vadd.f32 %v690_v48, %v547_v32  ;;  %v599_v32 = vpop.permute.xlu0 %598 }
 0x226   :  { %2757 = vtanh.f32 %v752_v44  ;;  %v753_v22 = vmul.f32 0.5, %v699_v23 }
 0x227   :  { %2759 = vtanh.f32 %v750_v49  ;;  %v751_v16 = vmul.f32 0.5, %v691_v27 }
 0x228   :  { %2761 = vtanh.f32 %v753_v22 }
 0x229   :  { %2763 = vtanh.f32 %v751_v16  ;;  %v2462_v37 = vpop.f32.mrb[4].mxu0 }
 0x22a   :  { %v712_v25 = vadd.f32 %v2462_v37, %v567_v38  ;;  %v703_v56 = vpop.f32.mrb[5].mxu0 }
 0x22b   :  { %v704_v41 = vadd.f32 %v703_v56, %v559_v18  ;;  %v2463_v43 = vpop.f32.mrb[6].mxu0 }
 0x22c   :  { %v3315_v53 = vmul.f32 0.5, %v712_v25  ;;  %v715_v39 = vadd.f32 %v2463_v43, %v571_v13  ;;  %v706_v51 = vpop.f32.mrb[7].mxu0  ;;  %v603_v13 = vpop.permute.xlu1 %602 }
 0x22d   :  { %v3317_v35 = vmul.f32 0.5, %v704_v41  ;;  %v707_v30 = vadd.f32 %v706_v51, %v563_v34 }
 0x22e   :  { %2765 = vtanh.f32 %v3315_v53  ;;  %v757_v29 = vmul.f32 0.5, %v715_v39 }
 0x22f   :  { %2767 = vtanh.f32 %v3317_v35  ;;  %v755_v54 = vmul.f32 0.5, %v707_v30 }
 0x230   :  { %v2758_v55 = vpop.eup %2757  ;;  %2769 = vtanh.f32 %v757_v29 }
 0x231   :  { %v2760_v61 = vpop.eup %2759  ;;  %v784_v62 = vadd.f32 1.0, %v2758_v55  ;;  %2771 = vtanh.f32 %v755_v54  ;;  %v2466_v57 = vpop.f32.mrb[8].mxu0 }
 0x232   :  { %v2762_v42 = vpop.eup %2761  ;;  %v782_v63 = vadd.f32 1.0, %v2760_v61  ;;  %v728_v58 = vadd.f32 %v2466_v57, %v583_v4  ;;  %v719_v2 = vpop.f32.mrb[9].mxu0 }
 0x233   :  { %v2764_v60 = vpop.eup %2763  ;;  %v785_v3 = vadd.f32 1.0, %v2762_v42  ;;  %v720_v6 = vadd.f32 %v719_v2, %v575_v52  ;;  %v2467_v46 = vpop.f32.mrb[10].mxu0  ;;  %v800_v9 = vmul.f32 %v784_v62, %v752_v44 }
 0x234   :  { %v783_v8 = vadd.f32 1.0, %v2764_v60  ;;  %v3321_v1 = vmul.f32 0.5, %v728_v58  ;;  %v731_v26 = vadd.f32 %v2467_v46, %v587_v36  ;;  %v722_v50 = vpop.f32.mrb[11].mxu0  ;;  %v798_v15 = vmul.f32 %v782_v63, %v750_v49 }
 0x235   :  { %v801_v10 = vmul.f32 %v785_v3, %v753_v22  ;;  %v758_v0 = vmul.f32 0.5, %v720_v6  ;;  %v723_v11 = vadd.f32 %v722_v50, %v579_v7 }
 0x236   :  { %v799_v12 = vmul.f32 %v783_v8, %v751_v16  ;;  %2773 = vtanh.f32 %v3321_v1  ;;  %v761_v24 = vmul.f32 0.5, %v731_v26 }
 0x237   :  { %2775 = vtanh.f32 %v758_v0  ;;  %v759_v17 = vmul.f32 0.5, %v723_v11  ;;  %v832_v47 = vpack.c.bf16 %v801_v10, %v800_v9  ;;  %v2687_v11 = vld [vmem:[%s3630_s3 + $0x50] sm:$0xff]  }
 0x238   :  { %v2766_v40 = vpop.eup %2765  ;;  %2777 = vtanh.f32 %v761_v24  ;;  %v831_v5 = vpack.c.bf16 %v799_v12, %v798_v15  ;;  %v2688_v15 = vld [vmem:[%s3630_s3 + $0x58] sm:$0xff]   ;;  %v2689_v12 = vld [vmem:[%s3630_s3 + $0x60] sm:$0xff]  }
 0x239   :  { %v2768_v28 = vpop.eup %2767  ;;  %v788_v33 = vadd.f32 1.0, %v2766_v40  ;;  %2779 = vtanh.f32 %v759_v17  ;;  %v2470_v18 = vpop.f32.mrb[12].mxu0  ;;  %v2693_v40 = vld [vmem:[%s3630_s3 + $0x80] sm:$0xff]  }
 0x23a   :  { %v2770_v34 = vpop.eup %2769  ;;  %v786_v38 = vadd.f32 1.0, %v2768_v28  ;;  %v744_v19 = vadd.f32 %v2470_v18, %v599_v32  ;;  %v735_v59 = vpop.f32.mrb[13].mxu0  ;;  %2472 = vmatprep.subr.bf16.mxu1 %v831_v5  ;;  %2520 = vmatprep.mubr.bf16.mxu0 %v2693_v40  ;;  %v3354_v28 = vld [vmem:[%s3627_s4] sm:$0xff]  ;;  %v3360_v32 = vld [vmem:[%s3627_s4 + $0x8] sm:$0xff] }
 0x23b   :  { %v2772_v20 = vpop.eup %2771  ;;  %v789_v21 = vadd.f32 1.0, %v2770_v34  ;;  %v736_v31 = vadd.f32 %v735_v59, %v591_v45  ;;  %v2471_v44 = vpop.f32.mrb[14].mxu0  ;;  %2473 = vmatpush3.bf16.msra.mxu1 %v831_v5  ;;  %v804_v22 = vmul.f32 %v788_v33, %v3315_v53  ;;  %v2937_v5 = vmov 3   ;;  %v3366_v33 = vld [vmem:[%s3627_s4 + $0x10] sm:$0xff]  ;;  %v3372_v18 = vld [vmem:[%s3627_s4 + $0x20] sm:$0xff]  ;;  %v3378_v34 = vld [vmem:[%s3627_s4 + $0x18] sm:$0xff] }
 0x23c   :  { %v787_v23 = vadd.f32 1.0, %v2772_v20  ;;  %v764_v48 = vmul.f32 0.5, %v744_v19  ;;  %v747_v49 = vadd.f32 %v2471_v44, %v603_v13  ;;  %v738_v27 = vpop.f32.mrb[15].mxu0  ;;  %2474 = vmatprep.subr.bf16.mxu1 %v832_v47  ;;  %v802_v37 = vmul.f32 %v786_v38, %v3317_v35  ;;  %2670 = vset.pattern.permute.xlu1 %v2937_v5  ;;  %v3384_v38 = vld [vmem:[%s3627_s4 + $0x30] sm:$0xff]  ;;  %v3390_v19 = vld [vmem:[%s3627_s4 + $0x28] sm:$0xff]  ;;  %v3396_v59 = vld [vmem:[%s3627_s4 + $0x40] sm:$0xff] }
 0x23d   :  { %v805_v52 = vmul.f32 %v789_v21, %v757_v29  ;;  %v762_v16 = vmul.f32 0.5, %v736_v31  ;;  %v739_v7 = vadd.f32 %v738_v27, %v595_v14  ;;  %2671 = vset.pattern.permute.xlu0 %v2937_v5  ;;  %1138 = vperm.xlu1 %2670, %v3354_v28   ;;  %v3402_v20 = vld [vmem:[%s3627_s4 + $0x38] sm:$0xff]  ;;  %v3408_v13 = vld [vmem:[%s3627_s4 + $0x50] sm:$0xff]  ;;  %v3414_v21 = vld [vmem:[%s3627_s4 + $0x48] sm:$0xff]  ;;  %v841_v27 = vpop.permute.xlu0 %840 }
 0x23e   :  { %v803_v25 = vmul.f32 %v787_v23, %v755_v54  ;;  %2781 = vtanh.f32 %v764_v48  ;;  %v765_v56 = vmul.f32 0.5, %v747_v49  ;;  %1142 = vperm.xlu0 %2671, %v3360_v32   ;;  %v3420_v31 = vld [vmem:[%s3627_s4 + $0x60] sm:$0xff]  ;;  %v3426_v44 = vld [vmem:[%s3627_s4 + $0x58] sm:$0xff]  ;;  %v3432_v23 = vld [vmem:[%s3627_s4 + $0x70] sm:$0xff] }
 0x23f   :  { %2783 = vtanh.f32 %v762_v16  ;;  %v763_v41 = vmul.f32 0.5, %v739_v7  ;;  %2475 = vmatpush3.bf16.msra.mxu1 %v832_v47  ;;  %v834_v43 = vpack.c.bf16 %v805_v52, %v804_v22  ;;  %v2692_v47 = vld [vmem:[%s3630_s3 + $0x78] sm:$0xff]   ;;  %v3438_v49 = vld [vmem:[%s3627_s4 + $0x68] sm:$0xff] }
 0x240   :  { %v2774_v39 = vpop.eup %2773  ;;  %2785 = vtanh.f32 %v765_v56  ;;  %v833_v51 = vpack.c.bf16 %v803_v25, %v802_v37  ;;  %v3444_v22 = vld [vmem:[%s3627_s4 + $0x78] sm:$0xff] }
 0x241   :  { %v2776_v4 = vpop.eup %2775  ;;  %v792_v30 = vadd.f32 1.0, %v2774_v39  ;;  %2787 = vtanh.f32 %v763_v41  ;;  %1146 = vperm.xlu1 %2670, %v3366_v33  }
 0x242   :  { %v2778_v36 = vpop.eup %2777  ;;  %v790_v53 = vadd.f32 1.0, %v2776_v4  ;;  %2476 = vmatprep.subr.bf16.mxu1 %v833_v51  ;;  %1154 = vperm.xlu0 %2671, %v3372_v18  }
 0x243   :  { %v2780_v29 = vpop.eup %2779  ;;  %v793_v55 = vadd.f32 1.0, %v2778_v36  ;;  %2477 = vmatpush3.bf16.msra.mxu1 %v833_v51  ;;  %v808_v54 = vmul.f32 %v792_v30, %v3321_v1 }
 0x244   :  { %v791_v35 = vadd.f32 1.0, %v2780_v29  ;;  %2478 = vmatprep.subr.bf16.mxu1 %v834_v43  ;;  %v806_v62 = vmul.f32 %v790_v53, %v758_v0  ;;  %v2686_v0 = vld [vmem:[%s3630_s3 + $0x48] sm:$0xff]  }
 0x245   :  { %v809_v61 = vmul.f32 %v793_v55, %v761_v24  ;;  %v2690_v24 = vld [vmem:[%s3630_s3 + $0x68] sm:$0xff]   ;;  %1150 = vperm.xlu1 %2670, %v3378_v34  }
 0x246   :  { %v807_v57 = vmul.f32 %v791_v35, %v759_v17  ;;  %v2691_v17 = vld [vmem:[%s3630_s3 + $0x70] sm:$0xff]   ;;  %1162 = vperm.xlu0 %2671, %v3384_v38  }
 0x247   :  { %2479 = vmatpush3.bf16.msra.mxu1 %v834_v43  ;;  %v836_v42 = vpack.c.bf16 %v809_v61, %v808_v54 }
 0x248   :  { %v2782_v63 = vpop.eup %2781  ;;  %v835_v58 = vpack.c.bf16 %v807_v57, %v806_v62 }
 0x249   :  { %v2784_v2 = vpop.eup %2783  ;;  %v796_v60 = vadd.f32 1.0, %v2782_v63  ;;  %1158 = vperm.xlu1 %2670, %v3390_v19  }
 0x24a   :  { %v2786_v45 = vpop.eup %2785  ;;  %v794_v3 = vadd.f32 1.0, %v2784_v2  ;;  %2480 = vmatprep.subr.bf16.mxu1 %v835_v58  ;;  %1170 = vperm.xlu0 %2671, %v3396_v59  }
 0x24b   :  { %v2788_v6 = vpop.eup %2787  ;;  %v797_v46 = vadd.f32 1.0, %v2786_v45  ;;  %2481 = vmatpush3.bf16.msra.mxu1 %v835_v58  ;;  %v812_v26 = vmul.f32 %v796_v60, %v764_v48  ;;  %v845_v48 = vpop.permute.xlu1 %844 }
 0x24c   :  { %v795_v8 = vadd.f32 1.0, %v2788_v6  ;;  %2482 = vmatprep.subr.bf16.mxu1 %v836_v42  ;;  %v810_v1 = vmul.f32 %v794_v3, %v762_v16  ;;  %v853_v16 = vpop.permute.xlu0 %852 }
 0x24d   :  { %v813_v50 = vmul.f32 %v797_v46, %v765_v56  ;;  %1166 = vperm.xlu1 %2670, %v3402_v20  }
 0x24e   :  { %v811_v14 = vmul.f32 %v795_v8, %v763_v41  ;;  %1178 = vperm.xlu0 %2671, %v3408_v13  }
 0x24f   :  { %2483 = vmatpush3.bf16.msra.mxu1 %v836_v42  ;;  %v838_v9 = vpack.c.bf16 %v813_v50, %v812_v26  ;;  %v849_v52 = vpop.permute.xlu1 %848 }
 0x250   :  { %v837_v10 = vpack.c.bf16 %v811_v14, %v810_v1  ;;  %v861_v37 = vpop.permute.xlu0 %860 }
 0x251   :  { %1174 = vperm.xlu1 %2670, %v3414_v21  }
 0x252   :  { %2484 = vmatprep.subr.bf16.mxu1 %v837_v10  ;;  %1186 = vperm.xlu0 %2671, %v3420_v31  }
 0x253   :  { %2485 = vmatpush3.bf16.msra.mxu1 %v837_v10  ;;  %v857_v7 = vpop.permute.xlu1 %856 }
 0x254   :  { %2486 = vmatprep.subr.bf16.mxu1 %v838_v9  ;;  %v869_v39 = vpop.permute.xlu0 %868 }
 0x255   :  { %1182 = vperm.xlu1 %2670, %v3426_v44  }
 0x256   :  { %1194 = vperm.xlu0 %2671, %v3432_v23  }
 0x257   :  { %2487 = vmatpush3.bf16.msra.mxu1 %v838_v9  ;;  %v865_v25 = vpop.permute.xlu1 %864 }
 0x258   :  { %v877_v62 = vpop.permute.xlu0 %876 }
 0x259   :  { %1190 = vperm.xlu1 %2670, %v3438_v49  }
 0x25a   :  { %2489 = vmatmul.mubr.bf16.vlgmr.msra.gmra.mrb[0].mxu1 %v2686_v0 }
 0x25b   :  { %2492 = vmatprep.mubr.bf16.mxu1 %v2687_v11  ;;  %v873_v54 = vpop.permute.xlu1 %872 }
 0x25c   :  { %v885_v50 = vpop.permute.xlu0 %884 }
 0x25d   :  { %1198 = vperm.xlu1 %2670, %v3444_v22  }
 0x25f   :  { %v881_v6 = vpop.permute.xlu1 %880 }
 0x262   :  { %2493 = vmatmul.mubr.bf16.gmra.mrb[4].mxu1 %v2688_v15 }
 0x263   :  { %2496 = vmatprep.mubr.bf16.mxu1 %v2689_v12 }
 0x26a   :  { %2497 = vmatmul.mubr.bf16.gmra.mrb[8].mxu1 %v2690_v24 }
 0x26b   :  { %2500 = vmatprep.mubr.bf16.mxu1 %v2691_v17 }
 0x272   :  { %2501 = vmatmul.mubr.bf16.gmra.mrb[12].mxu1 %v2692_v47  ;;  %v889_v47 = vpop.permute.xlu1 %888 }
 0x32d   :  { %v2490_v56 = vpop.f32.mrb[0].mxu1 }
 0x32e   :  { %v994_v41 = vadd.f32 %v2490_v56, %v849_v52  ;;  %v985_v43 = vpop.f32.mrb[1].mxu1 }
 0x32f   :  { %v986_v51 = vadd.f32 %v985_v43, %v841_v27  ;;  %v2491_v4 = vpop.f32.mrb[2].mxu1 }
 0x330   :  { %v1050_v30 = vmul.f32 0.5, %v994_v41  ;;  %v997_v36 = vadd.f32 %v2491_v4, %v853_v16  ;;  %v988_v53 = vpop.f32.mrb[3].mxu1 }
 0x331   :  { %v1048_v29 = vmul.f32 0.5, %v986_v51  ;;  %v989_v55 = vadd.f32 %v988_v53, %v845_v48 }
 0x332   :  { %2789 = vtanh.f32 %v1050_v30  ;;  %v1051_v35 = vmul.f32 0.5, %v997_v36 }
 0x333   :  { %2791 = vtanh.f32 %v1048_v29  ;;  %v1049_v61 = vmul.f32 0.5, %v989_v55 }
 0x334   :  { %2793 = vtanh.f32 %v1051_v35 }
 0x335   :  { %2795 = vtanh.f32 %v1049_v61  ;;  %v2494_v57 = vpop.f32.mrb[4].mxu1 }
 0x336   :  { %v1010_v42 = vadd.f32 %v2494_v57, %v865_v25  ;;  %v1001_v63 = vpop.f32.mrb[5].mxu1 }
 0x337   :  { %v1002_v58 = vadd.f32 %v1001_v63, %v857_v7  ;;  %v2495_v2 = vpop.f32.mrb[6].mxu1 }
 0x338   :  { %v3447_v60 = vmul.f32 0.5, %v1010_v42  ;;  %v1013_v45 = vadd.f32 %v2495_v2, %v869_v39  ;;  %v1004_v3 = vpop.f32.mrb[7].mxu1  ;;  %v897_v42 = vpop.permute.xlu1 %896 }
 0x339   :  { %v3449_v46 = vmul.f32 0.5, %v1002_v58  ;;  %v1005_v8 = vadd.f32 %v1004_v3, %v861_v37  ;;  %v893_v37 = vpop.permute.xlu0 %892 }
 0x33a   :  { %2797 = vtanh.f32 %v3447_v60  ;;  %v1055_v26 = vmul.f32 0.5, %v1013_v45 }
 0x33b   :  { %2799 = vtanh.f32 %v3449_v46  ;;  %v1053_v1 = vmul.f32 0.5, %v1005_v8 }
 0x33c   :  { %v2790_v14 = vpop.eup %2789  ;;  %2801 = vtanh.f32 %v1055_v26 }
 0x33d   :  { %v2792_v9 = vpop.eup %2791  ;;  %v1082_v10 = vadd.f32 1.0, %v2790_v14  ;;  %2803 = vtanh.f32 %v1053_v1  ;;  %v2498_v0 = vpop.f32.mrb[8].mxu1 }
 0x33e   :  { %v2794_v11 = vpop.eup %2793  ;;  %v1080_v15 = vadd.f32 1.0, %v2792_v9  ;;  %v1026_v12 = vadd.f32 %v2498_v0, %v881_v6  ;;  %v1017_v24 = vpop.f32.mrb[9].mxu1 }
 0x33f   :  { %v2796_v17 = vpop.eup %2795  ;;  %v1083_v40 = vadd.f32 1.0, %v2794_v11  ;;  %v1018_v5 = vadd.f32 %v1017_v24, %v873_v54  ;;  %v2499_v48 = vpop.f32.mrb[10].mxu1  ;;  %v1098_v25 = vmul.f32 %v1082_v10, %v1050_v30 }
 0x340   :  { %v1081_v27 = vadd.f32 1.0, %v2796_v17  ;;  %v3453_v52 = vmul.f32 0.5, %v1026_v12  ;;  %v1029_v16 = vadd.f32 %v2499_v48, %v885_v50  ;;  %v1020_v7 = vpop.f32.mrb[11].mxu1  ;;  %v1096_v39 = vmul.f32 %v1080_v15, %v1048_v29 }
 0x341   :  { %v1099_v56 = vmul.f32 %v1083_v40, %v1051_v35  ;;  %v1056_v41 = vmul.f32 0.5, %v1018_v5  ;;  %v1021_v43 = vadd.f32 %v1020_v7, %v877_v62 }
 0x342   :  { %v1097_v51 = vmul.f32 %v1081_v27, %v1049_v61  ;;  %2805 = vtanh.f32 %v3453_v52  ;;  %v1059_v4 = vmul.f32 0.5, %v1029_v16  ;;  %v901_v61 = vpop.permute.xlu0 %900 }
 0x343   :  { %2807 = vtanh.f32 %v1056_v41  ;;  %v1057_v36 = vmul.f32 0.5, %v1021_v43  ;;  %v1130_v53 = vpack.c.bf16 %v1099_v56, %v1098_v25 }
 0x344   :  { %v2798_v55 = vpop.eup %2797  ;;  %2809 = vtanh.f32 %v1059_v4  ;;  %v1129_v54 = vpack.c.bf16 %v1097_v51, %v1096_v39 }
 0x345   :  { %v2800_v57 = vpop.eup %2799  ;;  %v1086_v63 = vadd.f32 1.0, %v2798_v55  ;;  %2811 = vtanh.f32 %v1057_v36  ;;  %v2502_v58 = vpop.f32.mrb[12].mxu1 }
 0x346   :  { %v2802_v30 = vpop.eup %2801  ;;  %v1084_v35 = vadd.f32 1.0, %v2800_v57  ;;  %v1042_v2 = vadd.f32 %v2502_v58, %v897_v42  ;;  %v1033_v62 = vpop.f32.mrb[13].mxu1  ;;  %2504 = vmatprep.subr.bf16.mxu0 %v1129_v54 }
 0x347   :  { %v2804_v29 = vpop.eup %2803  ;;  %v1087_v45 = vadd.f32 1.0, %v2802_v30  ;;  %v1034_v3 = vadd.f32 %v1033_v62, %v889_v47  ;;  %v2503_v6 = vpop.f32.mrb[14].mxu1  ;;  %2505 = vmatpush3.bf16.msra.mxu0 %v1129_v54  ;;  %v1102_v10 = vmul.f32 %v1086_v63, %v3447_v60  ;;  %v2694_v62 = vld [vmem:[%s3630_s3 + $0x88] sm:$0xff]  }
 0x348   :  { %v1085_v8 = vadd.f32 1.0, %v2804_v29  ;;  %v1062_v50 = vmul.f32 0.5, %v1042_v2  ;;  %v1045_v14 = vadd.f32 %v2503_v6, %v901_v61  ;;  %v1036_v9 = vpop.f32.mrb[15].mxu1  ;;  %2506 = vmatprep.subr.bf16.mxu0 %v1130_v53  ;;  %v1100_v12 = vmul.f32 %v1084_v35, %v3449_v46  ;;  %v2695_v29 = vld [vmem:[%s3630_s3 + $0x90] sm:$0xff]   ;;  %v2696_v61 = vld [vmem:[%s3630_s3 + $0x98] sm:$0xff]  }
 0x349   :  { %v1103_v0 = vmul.f32 %v1087_v45, %v1055_v26  ;;  %v1060_v11 = vmul.f32 0.5, %v1034_v3  ;;  %v1037_v15 = vadd.f32 %v1036_v9, %v893_v37  ;;  %v2697_v45 = vld [vmem:[%s3630_s3 + $0xa0] sm:$0xff]   ;;  %v2698_v3 = vld [vmem:[%s3630_s3 + $0xa8] sm:$0xff]   ;;  %v2699_v6 = vld [vmem:[%s3630_s3 + $0xb0] sm:$0xff]   ;;  %v1139_v9 = vpop.permute.xlu1 %1138 }
 0x34a   :  { %v1101_v24 = vmul.f32 %v1085_v8, %v1053_v1  ;;  %2813 = vtanh.f32 %v1062_v50  ;;  %v1063_v17 = vmul.f32 0.5, %v1045_v14  ;;  %v2700_v8 = vld [vmem:[%s3630_s3 + $0xb8] sm:$0xff]   ;;  %v2938_v14 = vmov 4  }
 0x34b   :  { %2815 = vtanh.f32 %v1060_v11  ;;  %v1061_v40 = vmul.f32 0.5, %v1037_v15  ;;  %2507 = vmatpush3.bf16.msra.mxu0 %v1130_v53  ;;  %v1132_v47 = vpack.c.bf16 %v1103_v0, %v1102_v10  ;;  %2672 = vset.pattern.permute.xlu0 %v2938_v14  ;;  %v1143_v0 = vpop.permute.xlu0 %1142 }
 0x34c   :  { %v2806_v5 = vpop.eup %2805  ;;  %2817 = vtanh.f32 %v1063_v17  ;;  %v1131_v48 = vpack.c.bf16 %v1101_v24, %v1100_v12  ;;  %2673 = vset.pattern.permute.xlu1 %v2938_v14  ;;  %1436 = vperm.xlu0 %2672, %v3354_v28  }
 0x34d   :  { %v2808_v27 = vpop.eup %2807  ;;  %v1090_v16 = vadd.f32 1.0, %v2806_v5  ;;  %2819 = vtanh.f32 %v1061_v40  ;;  %1440 = vperm.xlu1 %2673, %v3360_v32   ;;  %v1147_v10 = vpop.permute.xlu1 %1146 }
 0x34e   :  { %v2810_v7 = vpop.eup %2809  ;;  %v1088_v60 = vadd.f32 1.0, %v2808_v27  ;;  %2508 = vmatprep.subr.bf16.mxu0 %v1131_v48 }
 0x34f   :  { %v2812_v26 = vpop.eup %2811  ;;  %v1091_v37 = vadd.f32 1.0, %v2810_v7  ;;  %2509 = vmatpush3.bf16.msra.mxu0 %v1131_v48  ;;  %v1106_v1 = vmul.f32 %v1090_v16, %v3453_v52  ;;  %v1155_v15 = vpop.permute.xlu0 %1154 }
 0x350   :  { %v1089_v46 = vadd.f32 1.0, %v2812_v26  ;;  %2510 = vmatprep.subr.bf16.mxu0 %v1132_v47  ;;  %v1104_v56 = vmul.f32 %v1088_v60, %v1056_v41  ;;  %1448 = vperm.xlu0 %2672, %v3378_v34  }
 0x351   :  { %v1107_v25 = vmul.f32 %v1091_v37, %v1059_v4  ;;  %1444 = vperm.xlu1 %2673, %v3366_v33  }
 0x352   :  { %v1105_v43 = vmul.f32 %v1089_v46, %v1057_v36 }
 0x353   :  { %2511 = vmatpush3.bf16.msra.mxu0 %v1132_v47  ;;  %v1134_v39 = vpack.c.bf16 %v1107_v25, %v1106_v1  ;;  %v1163_v24 = vpop.permute.xlu0 %1162 }
 0x354   :  { %v2814_v51 = vpop.eup %2813  ;;  %v1133_v53 = vpack.c.bf16 %v1105_v43, %v1104_v56  ;;  %1456 = vperm.xlu0 %2672, %v3390_v19  }
 0x355   :  { %v2816_v55 = vpop.eup %2815  ;;  %v1094_v54 = vadd.f32 1.0, %v2814_v51  ;;  %1452 = vperm.xlu1 %2673, %v3372_v18  }
 0x356   :  { %v2818_v57 = vpop.eup %2817  ;;  %v1092_v42 = vadd.f32 1.0, %v2816_v55  ;;  %2512 = vmatprep.subr.bf16.mxu0 %v1133_v53 }
 0x357   :  { %v2820_v63 = vpop.eup %2819  ;;  %v1095_v58 = vadd.f32 1.0, %v2818_v57  ;;  %2513 = vmatpush3.bf16.msra.mxu0 %v1133_v53  ;;  %v1110_v35 = vmul.f32 %v1094_v54, %v1062_v50  ;;  %v2701_v50 = vld [vmem:[%s3630_s3 + $0xc0] sm:$0xff]   ;;  %v1171_v1 = vpop.permute.xlu0 %1170 }
 0x358   :  { %v1093_v30 = vadd.f32 1.0, %v2820_v63  ;;  %2514 = vmatprep.subr.bf16.mxu0 %v1134_v39  ;;  %v1108_v52 = vmul.f32 %v1092_v42, %v1060_v11  ;;  %2552 = vmatprep.mubr.bf16.mxu1 %v2701_v50  ;;  %v1151_v11 = vpop.permute.xlu1 %1150 }
 0x359   :  { %v1111_v2 = vmul.f32 %v1095_v58, %v1063_v17  ;;  %1464 = vperm.xlu0 %2672, %v3402_v20   ;;  %1460 = vperm.xlu1 %2673, %v3384_v38  }
 0x35a   :  { %v1109_v4 = vmul.f32 %v1093_v30, %v1061_v40 }
 0x35b   :  { %2515 = vmatpush3.bf16.msra.mxu0 %v1134_v39  ;;  %v1136_v41 = vpack.c.bf16 %v1111_v2, %v1110_v35  ;;  %v1179_v63 = vpop.permute.xlu0 %1178 }
 0x35c   :  { %v1135_v36 = vpack.c.bf16 %v1109_v4, %v1108_v52  ;;  %v1159_v12 = vpop.permute.xlu1 %1158 }
 0x35d   :  { %1472 = vperm.xlu0 %2672, %v3414_v21   ;;  %1468 = vperm.xlu1 %2673, %v3396_v59  }
 0x35e   :  { %2516 = vmatprep.subr.bf16.mxu0 %v1135_v36 }
 0x35f   :  { %2517 = vmatpush3.bf16.msra.mxu0 %v1135_v36 }
 0x360   :  { %2518 = vmatprep.subr.bf16.mxu0 %v1136_v41  ;;  %v1167_v5 = vpop.permute.xlu1 %1166 }
 0x361   :  { %1480 = vperm.xlu0 %2672, %v3426_v44   ;;  %1476 = vperm.xlu1 %2673, %v3408_v13  }
 0x363   :  { %2519 = vmatpush3.bf16.msra.mxu0 %v1136_v41 }
 0x364   :  { %v1175_v56 = vpop.permute.xlu1 %1174 }
 0x365   :  { %1488 = vperm.xlu0 %2672, %v3438_v49   ;;  %1484 = vperm.xlu1 %2673, %v3420_v31  }
 0x366   :  { %2521 = vmatmul.mubr.bf16.vlgmr.msra.gmra.mrb[16].mxu0 %v2694_v62 }
 0x367   :  { %2524 = vmatprep.mubr.bf16.mxu0 %v2695_v29 }
 0x368   :  { %v1183_v2 = vpop.permute.xlu1 %1182 }
 0x369   :  { %1496 = vperm.xlu0 %2672, %v3444_v22   ;;  %1492 = vperm.xlu1 %2673, %v3432_v23  }
 0x36e   :  { %2525 = vmatmul.mubr.bf16.gmra.mrb[20].mxu0 %v2696_v61 }
 0x36f   :  { %2528 = vmatprep.mubr.bf16.mxu0 %v2697_v45 }
 0x376   :  { %2529 = vmatmul.mubr.bf16.gmra.mrb[24].mxu0 %v2698_v3 }
 0x377   :  { %2532 = vmatprep.mubr.bf16.mxu0 %v2699_v6 }
 0x37e   :  { %2533 = vmatmul.mubr.bf16.gmra.mrb[28].mxu0 %v2700_v8  ;;  %v1187_v8 = vpop.permute.xlu0 %1186 }
 0x439   :  { %v2522_v17 = vpop.f32.mrb[16].mxu0 }
 0x43a   :  { %v1292_v40 = vadd.f32 %v2522_v17, %v1147_v10  ;;  %v1283_v47 = vpop.f32.mrb[17].mxu0 }
 0x43b   :  { %v1284_v48 = vadd.f32 %v1283_v47, %v1139_v9  ;;  %v2523_v27 = vpop.f32.mrb[18].mxu0 }
 0x43c   :  { %v1348_v16 = vmul.f32 0.5, %v1292_v40  ;;  %v1295_v7 = vadd.f32 %v2523_v27, %v1151_v11  ;;  %v1286_v60 = vpop.f32.mrb[19].mxu0 }
 0x43d   :  { %v1346_v26 = vmul.f32 0.5, %v1284_v48  ;;  %v1287_v37 = vadd.f32 %v1286_v60, %v1143_v0 }
 0x43e   :  { %2821 = vtanh.f32 %v1348_v16  ;;  %v1349_v46 = vmul.f32 0.5, %v1295_v7 }
 0x43f   :  { %2823 = vtanh.f32 %v1346_v26  ;;  %v1347_v25 = vmul.f32 0.5, %v1287_v37 }
 0x440   :  { %2825 = vtanh.f32 %v1349_v46 }
 0x441   :  { %2827 = vtanh.f32 %v1347_v25  ;;  %v2526_v43 = vpop.f32.mrb[20].mxu0 }
 0x442   :  { %v1308_v39 = vadd.f32 %v2526_v43, %v1163_v24  ;;  %v1299_v51 = vpop.f32.mrb[21].mxu0 }
 0x443   :  { %v1300_v53 = vadd.f32 %v1299_v51, %v1155_v15  ;;  %v2527_v55 = vpop.f32.mrb[22].mxu0 }
 0x444   :  { %v3499_v54 = vmul.f32 0.5, %v1308_v39  ;;  %v1311_v57 = vadd.f32 %v2527_v55, %v1167_v5  ;;  %v1302_v42 = vpop.f32.mrb[23].mxu0  ;;  %v1195_v39 = vpop.permute.xlu0 %1194 }
 0x445   :  { %v3501_v58 = vmul.f32 0.5, %v1300_v53  ;;  %v1303_v30 = vadd.f32 %v1302_v42, %v1159_v12  ;;  %v1191_v12 = vpop.permute.xlu1 %1190 }
 0x446   :  { %2829 = vtanh.f32 %v3499_v54  ;;  %v1353_v35 = vmul.f32 0.5, %v1311_v57 }
 0x447   :  { %2831 = vtanh.f32 %v3501_v58  ;;  %v1351_v52 = vmul.f32 0.5, %v1303_v30 }
 0x448   :  { %v2822_v4 = vpop.eup %2821  ;;  %2833 = vtanh.f32 %v1353_v35 }
 0x449   :  { %v2824_v41 = vpop.eup %2823  ;;  %v1380_v36 = vadd.f32 1.0, %v2822_v4  ;;  %2835 = vtanh.f32 %v1351_v52  ;;  %v2530_v62 = vpop.f32.mrb[24].mxu0 }
 0x44a   :  { %v2826_v29 = vpop.eup %2825  ;;  %v1378_v61 = vadd.f32 1.0, %v2824_v41  ;;  %v1324_v45 = vadd.f32 %v2530_v62, %v1179_v63  ;;  %v1315_v3 = vpop.f32.mrb[25].mxu0 }
 0x44b   :  { %v2828_v6 = vpop.eup %2827  ;;  %v1381_v50 = vadd.f32 1.0, %v2826_v29  ;;  %v1316_v14 = vadd.f32 %v1315_v3, %v1171_v1  ;;  %v2531_v9 = vpop.f32.mrb[26].mxu0  ;;  %v1396_v24 = vmul.f32 %v1380_v36, %v1348_v16 }
 0x44c   :  { %v1379_v10 = vadd.f32 1.0, %v2828_v6  ;;  %v3505_v0 = vmul.f32 0.5, %v1324_v45  ;;  %v1327_v11 = vadd.f32 %v2531_v9, %v1183_v2  ;;  %v1318_v15 = vpop.f32.mrb[27].mxu0  ;;  %v1394_v5 = vmul.f32 %v1378_v61, %v1346_v26 }
 0x44d   :  { %v1397_v17 = vmul.f32 %v1381_v50, %v1349_v46  ;;  %v1354_v40 = vmul.f32 0.5, %v1316_v14  ;;  %v1319_v47 = vadd.f32 %v1318_v15, %v1175_v56 }
 0x44e   :  { %v1395_v48 = vmul.f32 %v1379_v10, %v1347_v25  ;;  %2837 = vtanh.f32 %v3505_v0  ;;  %v1357_v27 = vmul.f32 0.5, %v1327_v11  ;;  %v1199_v25 = vpop.permute.xlu1 %1198 }
 0x44f   :  { %2839 = vtanh.f32 %v1354_v40  ;;  %v1355_v7 = vmul.f32 0.5, %v1319_v47  ;;  %v1428_v60 = vpack.c.bf16 %v1397_v17, %v1396_v24 }
 0x450   :  { %v2830_v37 = vpop.eup %2829  ;;  %2841 = vtanh.f32 %v1357_v27  ;;  %v1427_v1 = vpack.c.bf16 %v1395_v48, %v1394_v5 }
 0x451   :  { %v2832_v43 = vpop.eup %2831  ;;  %v1384_v51 = vadd.f32 1.0, %v2830_v37  ;;  %2843 = vtanh.f32 %v1355_v7  ;;  %v2534_v53 = vpop.f32.mrb[28].mxu0 }
 0x452   :  { %v2834_v16 = vpop.eup %2833  ;;  %v1382_v46 = vadd.f32 1.0, %v2832_v43  ;;  %v1340_v55 = vadd.f32 %v2534_v53, %v1195_v39  ;;  %v1331_v56 = vpop.f32.mrb[29].mxu0  ;;  %2536 = vmatprep.subr.bf16.mxu1 %v1427_v1 }
 0x453   :  { %v2836_v26 = vpop.eup %2835  ;;  %v1385_v57 = vadd.f32 1.0, %v2834_v16  ;;  %v1332_v42 = vadd.f32 %v1331_v56, %v1187_v8  ;;  %v2535_v63 = vpop.f32.mrb[30].mxu0  ;;  %2537 = vmatpush3.bf16.msra.mxu1 %v1427_v1  ;;  %v1400_v36 = vmul.f32 %v1384_v51, %v3499_v54  ;;  %v2702_v56 = vld [vmem:[%s3630_s3 + $0xc8] sm:$0xff]  }
 0x454   :  { %v1383_v30 = vadd.f32 1.0, %v2836_v26  ;;  %v1360_v2 = vmul.f32 0.5, %v1340_v55  ;;  %v1343_v4 = vadd.f32 %v2535_v63, %v1199_v25  ;;  %v1334_v41 = vpop.f32.mrb[31].mxu0  ;;  %2538 = vmatprep.subr.bf16.mxu1 %v1428_v60  ;;  %v1398_v45 = vmul.f32 %v1382_v46, %v3501_v58  ;;  %v2703_v26 = vld [vmem:[%s3630_s3 + $0xd0] sm:$0xff]   ;;  %v2704_v25 = vld [vmem:[%s3630_s3 + $0xd8] sm:$0xff]  }
 0x455   :  { %v1401_v62 = vmul.f32 %v1385_v57, %v1353_v35  ;;  %v1358_v29 = vmul.f32 0.5, %v1332_v42  ;;  %v1335_v61 = vadd.f32 %v1334_v41, %v1191_v12  ;;  %v2705_v57 = vld [vmem:[%s3630_s3 + $0xe0] sm:$0xff]   ;;  %v2706_v42 = vld [vmem:[%s3630_s3 + $0xe8] sm:$0xff]   ;;  %v2707_v63 = vld [vmem:[%s3630_s3 + $0xf0] sm:$0xff]  }
 0x456   :  { %v1399_v3 = vmul.f32 %v1383_v30, %v1351_v52  ;;  %2845 = vtanh.f32 %v1360_v2  ;;  %v1361_v6 = vmul.f32 0.5, %v1343_v4  ;;  %v2708_v30 = vld [vmem:[%s3630_s3 + $0xf8] sm:$0xff]   ;;  %v2939_v4 = vmov 5  }
 0x457   :  { %2847 = vtanh.f32 %v1358_v29  ;;  %v1359_v50 = vmul.f32 0.5, %v1335_v61  ;;  %2539 = vmatpush3.bf16.msra.mxu1 %v1428_v60  ;;  %v1430_v8 = vpack.c.bf16 %v1401_v62, %v1400_v36  ;;  %2674 = vset.pattern.permute.xlu1 %v2939_v4 }
 0x458   :  { %v2838_v14 = vpop.eup %2837  ;;  %2849 = vtanh.f32 %v1361_v6  ;;  %v1429_v9 = vpack.c.bf16 %v1399_v3, %v1398_v45  ;;  %2675 = vset.pattern.permute.xlu0 %v2939_v4  ;;  %1734 = vperm.xlu1 %2674, %v3354_v28   ;;  %v1441_v28 = vpop.permute.xlu1 %1440 }
 0x459   :  { %v2840_v10 = vpop.eup %2839  ;;  %v1388_v11 = vadd.f32 1.0, %v2838_v14  ;;  %2851 = vtanh.f32 %v1359_v50  ;;  %1738 = vperm.xlu0 %2675, %v3360_v32   ;;  %v1437_v32 = vpop.permute.xlu0 %1436 }
 0x45a   :  { %v2842_v15 = vpop.eup %2841  ;;  %v1386_v54 = vadd.f32 1.0, %v2840_v10  ;;  %2540 = vmatprep.subr.bf16.mxu1 %v1429_v9 }
 0x45b   :  { %v2844_v35 = vpop.eup %2843  ;;  %v1389_v12 = vadd.f32 1.0, %v2842_v15  ;;  %2541 = vmatpush3.bf16.msra.mxu1 %v1429_v9  ;;  %v1404_v52 = vmul.f32 %v1388_v11, %v3505_v0 }
 0x45c   :  { %v1387_v58 = vadd.f32 1.0, %v2844_v35  ;;  %2542 = vmatprep.subr.bf16.mxu1 %v1430_v8  ;;  %v1402_v17 = vmul.f32 %v1386_v54, %v1354_v40  ;;  %1742 = vperm.xlu1 %2674, %v3366_v33   ;;  %v1445_v33 = vpop.permute.xlu1 %1444 }
 0x45d   :  { %v1405_v24 = vmul.f32 %v1389_v12, %v1357_v27  ;;  %1750 = vperm.xlu0 %2675, %v3372_v18   ;;  %v1449_v18 = vpop.permute.xlu0 %1448 }
 0x45e   :  { %v1403_v47 = vmul.f32 %v1387_v58, %v1355_v7 }
 0x45f   :  { %2543 = vmatpush3.bf16.msra.mxu1 %v1430_v8  ;;  %v1432_v5 = vpack.c.bf16 %v1405_v24, %v1404_v52 }
 0x460   :  { %v2846_v48 = vpop.eup %2845  ;;  %v1431_v60 = vpack.c.bf16 %v1403_v47, %v1402_v17  ;;  %1746 = vperm.xlu1 %2674, %v3378_v34   ;;  %v1453_v34 = vpop.permute.xlu1 %1452 }
 0x461   :  { %v2848_v37 = vpop.eup %2847  ;;  %v1392_v1 = vadd.f32 1.0, %v2846_v48  ;;  %1758 = vperm.xlu0 %2675, %v3384_v38   ;;  %v1457_v38 = vpop.permute.xlu0 %1456 }
 0x462   :  { %v2850_v43 = vpop.eup %2849  ;;  %v1390_v39 = vadd.f32 1.0, %v2848_v37  ;;  %2544 = vmatprep.subr.bf16.mxu1 %v1431_v60 }
 0x463   :  { %v2852_v51 = vpop.eup %2851  ;;  %v1393_v53 = vadd.f32 1.0, %v2850_v43  ;;  %2545 = vmatpush3.bf16.msra.mxu1 %v1431_v60  ;;  %v1408_v46 = vmul.f32 %v1392_v1, %v1360_v2  ;;  %v2709_v2 = vld [vmem:[%s3630_s3 + $0x100] sm:$0xff]  }
 0x464   :  { %v1391_v16 = vadd.f32 1.0, %v2852_v51  ;;  %2546 = vmatprep.subr.bf16.mxu1 %v1432_v5  ;;  %v1406_v0 = vmul.f32 %v1390_v39, %v1358_v29  ;;  %2584 = vmatprep.mubr.bf16.mxu0 %v2709_v2 }
 0x465   :  { %v1409_v55 = vmul.f32 %v1393_v53, %v1361_v6  ;;  %1754 = vperm.xlu1 %2674, %v3390_v19   ;;  %1766 = vperm.xlu0 %2675, %v3396_v59   ;;  %v1461_v19 = vpop.permute.xlu1 %1460 }
 0x466   :  { %v1407_v27 = vmul.f32 %v1391_v16, %v1359_v50 }
 0x467   :  { %2547 = vmatpush3.bf16.msra.mxu1 %v1432_v5  ;;  %v1434_v40 = vpack.c.bf16 %v1409_v55, %v1408_v46 }
 0x468   :  { %v1433_v7 = vpack.c.bf16 %v1407_v27, %v1406_v0 }
 0x469   :  { %1762 = vperm.xlu1 %2674, %v3402_v20   ;;  %1774 = vperm.xlu0 %2675, %v3408_v13   ;;  %v1469_v61 = vpop.permute.xlu1 %1468 }
 0x46a   :  { %2548 = vmatprep.subr.bf16.mxu1 %v1433_v7 }
 0x46b   :  { %2549 = vmatpush3.bf16.msra.mxu1 %v1433_v7 }
 0x46c   :  { %2550 = vmatprep.subr.bf16.mxu1 %v1434_v40 }
 0x46d   :  { %1770 = vperm.xlu1 %2674, %v3414_v21   ;;  %1782 = vperm.xlu0 %2675, %v3420_v31   ;;  %v1465_v21 = vpop.permute.xlu0 %1464  ;;  %v1477_v15 = vpop.permute.xlu1 %1476 }
 0x46f   :  { %2551 = vmatpush3.bf16.msra.mxu1 %v1434_v40 }
 0x471   :  { %1778 = vperm.xlu1 %2674, %v3426_v44   ;;  %1790 = vperm.xlu0 %2675, %v3432_v23   ;;  %v1473_v45 = vpop.permute.xlu0 %1472  ;;  %v1485_v39 = vpop.permute.xlu1 %1484 }
 0x472   :  { %2553 = vmatmul.mubr.bf16.vlgmr.msra.gmra.mrb[16].mxu1 %v2702_v56 }
 0x473   :  { %2556 = vmatprep.mubr.bf16.mxu1 %v2703_v26 }
 0x475   :  { %1786 = vperm.xlu1 %2674, %v3438_v49   ;;  %v1481_v58 = vpop.permute.xlu0 %1480 }
 0x479   :  { %1794 = vperm.xlu1 %2674, %v3444_v22   ;;  %v1489_v40 = vpop.permute.xlu0 %1488 }
 0x47a   :  { %2557 = vmatmul.mubr.bf16.gmra.mrb[20].mxu1 %v2704_v25 }
 0x47b   :  { %2560 = vmatprep.mubr.bf16.mxu1 %v2705_v57 }
 0x482   :  { %2561 = vmatmul.mubr.bf16.gmra.mrb[24].mxu1 %v2706_v42 }
 0x483   :  { %2564 = vmatprep.mubr.bf16.mxu1 %v2707_v63 }
 0x48a   :  { %2565 = vmatmul.mubr.bf16.gmra.mrb[28].mxu1 %v2708_v30 }
 0x545   :  { %v2554_v59 = vpop.f32.mrb[16].mxu1 }
 0x546   :  { %v1590_v20 = vadd.f32 %v2554_v59, %v1445_v33  ;;  %v1581_v13 = vpop.f32.mrb[17].mxu1  ;;  %v1493_v33 = vpop.permute.xlu1 %1492 }
 0x547   :  { %v1582_v31 = vadd.f32 %v1581_v13, %v1437_v32  ;;  %v2555_v41 = vpop.f32.mrb[18].mxu1 }
 0x548   :  { %v1646_v44 = vmul.f32 0.5, %v1590_v20  ;;  %v1593_v36 = vadd.f32 %v2555_v41, %v1449_v18  ;;  %v1584_v23 = vpop.f32.mrb[19].mxu1 }
 0x549   :  { %v1644_v62 = vmul.f32 0.5, %v1582_v31  ;;  %v1585_v29 = vadd.f32 %v1584_v23, %v1441_v28 }
 0x54a   :  { %2853 = vtanh.f32 %v1646_v44  ;;  %v1647_v49 = vmul.f32 0.5, %v1593_v36 }
 0x54b   :  { %2855 = vtanh.f32 %v1644_v62  ;;  %v1645_v22 = vmul.f32 0.5, %v1585_v29 }
 0x54c   :  { %2857 = vtanh.f32 %v1647_v49 }
 0x54d   :  { %2859 = vtanh.f32 %v1645_v22  ;;  %v2558_v3 = vpop.f32.mrb[20].mxu1 }
 0x54e   :  { %v1606_v6 = vadd.f32 %v2558_v3, %v1461_v19  ;;  %v1597_v50 = vpop.f32.mrb[21].mxu1 }
 0x54f   :  { %v1598_v8 = vadd.f32 %v1597_v50, %v1453_v34  ;;  %v2559_v14 = vpop.f32.mrb[22].mxu1 }
 0x550   :  { %v3551_v9 = vmul.f32 0.5, %v1606_v6  ;;  %v1609_v10 = vadd.f32 %v2559_v14, %v1465_v21  ;;  %v1600_v11 = vpop.f32.mrb[23].mxu1  ;;  %v1497_v21 = vpop.permute.xlu0 %1496 }
 0x551   :  { %v3553_v54 = vmul.f32 0.5, %v1598_v8  ;;  %v1601_v35 = vadd.f32 %v1600_v11, %v1457_v38 }
 0x552   :  { %2861 = vtanh.f32 %v3551_v9  ;;  %v1651_v12 = vmul.f32 0.5, %v1609_v10 }
 0x553   :  { %2863 = vtanh.f32 %v3553_v54  ;;  %v1649_v52 = vmul.f32 0.5, %v1601_v35 }
 0x554   :  { %v2854_v24 = vpop.eup %2853  ;;  %2865 = vtanh.f32 %v1651_v12 }
 0x555   :  { %v2856_v17 = vpop.eup %2855  ;;  %v1678_v47 = vadd.f32 1.0, %v2854_v24  ;;  %2867 = vtanh.f32 %v1649_v52  ;;  %v2562_v5 = vpop.f32.mrb[24].mxu1 }
 0x556   :  { %v2858_v48 = vpop.eup %2857  ;;  %v1676_v60 = vadd.f32 1.0, %v2856_v17  ;;  %v1622_v37 = vadd.f32 %v2562_v5, %v1477_v15  ;;  %v1613_v1 = vpop.f32.mrb[25].mxu1 }
 0x557   :  { %v2860_v43 = vpop.eup %2859  ;;  %v1679_v51 = vadd.f32 1.0, %v2858_v48  ;;  %v1614_v53 = vadd.f32 %v1613_v1, %v1469_v61  ;;  %v2563_v16 = vpop.f32.mrb[26].mxu1  ;;  %v1694_v7 = vmul.f32 %v1678_v47, %v1646_v44 }
 0x558   :  { %v1677_v46 = vadd.f32 1.0, %v2860_v43  ;;  %v3557_v55 = vmul.f32 0.5, %v1622_v37  ;;  %v1625_v0 = vadd.f32 %v2563_v16, %v1481_v58  ;;  %v1616_v27 = vpop.f32.mrb[27].mxu1  ;;  %v1692_v57 = vmul.f32 %v1676_v60, %v1644_v62 }
 0x559   :  { %v1695_v56 = vmul.f32 %v1679_v51, %v1647_v49  ;;  %v1652_v26 = vmul.f32 0.5, %v1614_v53  ;;  %v1617_v25 = vadd.f32 %v1616_v27, %v1473_v45 }
 0x55a   :  { %v1693_v42 = vmul.f32 %v1677_v46, %v1645_v22  ;;  %2869 = vtanh.f32 %v3557_v55  ;;  %v1655_v63 = vmul.f32 0.5, %v1625_v0 }
 0x55b   :  { %2871 = vtanh.f32 %v1652_v26  ;;  %v1653_v30 = vmul.f32 0.5, %v1617_v25  ;;  %v1726_v2 = vpack.c.bf16 %v1695_v56, %v1694_v7  ;;  %v2711_v25 = vld [vmem:[%s3630_s3 + $0x110] sm:$0xff]  }
 0x55c   :  { %v2862_v4 = vpop.eup %2861  ;;  %2873 = vtanh.f32 %v1655_v63  ;;  %v1725_v28 = vpack.c.bf16 %v1693_v42, %v1692_v57  ;;  %v2712_v57 = vld [vmem:[%s3630_s3 + $0x118] sm:$0xff]   ;;  %v2713_v42 = vld [vmem:[%s3630_s3 + $0x120] sm:$0xff]  }
 0x55d   :  { %v2864_v32 = vpop.eup %2863  ;;  %v1682_v18 = vadd.f32 1.0, %v2862_v4  ;;  %2875 = vtanh.f32 %v1653_v30  ;;  %v2566_v34 = vpop.f32.mrb[28].mxu1  ;;  %v2717_v4 = vld [vmem:[%s3630_s3 + $0x140] sm:$0xff]  }
 0x55e   :  { %v2866_v38 = vpop.eup %2865  ;;  %v1680_v19 = vadd.f32 1.0, %v2864_v32  ;;  %v1638_v59 = vadd.f32 %v2566_v34, %v1493_v33  ;;  %v1629_v20 = vpop.f32.mrb[29].mxu1  ;;  %2568 = vmatprep.subr.bf16.mxu0 %v1725_v28  ;;  %2616 = vmatprep.mubr.bf16.mxu1 %v2717_v4  ;;  %v2933_v32 = vld [vmem:[%s3627_s4] sm:$0xff] }
 0x55f   :  { %v2868_v13 = vpop.eup %2867  ;;  %v1683_v31 = vadd.f32 1.0, %v2866_v38  ;;  %v1630_v41 = vadd.f32 %v1629_v20, %v1485_v39  ;;  %v2567_v44 = vpop.f32.mrb[30].mxu1  ;;  %2569 = vmatpush3.bf16.msra.mxu0 %v1725_v28  ;;  %v1698_v49 = vmul.f32 %v1682_v18, %v3551_v9  ;;  %v2940_v28 = vmov 6  }
 0x560   :  { %v1681_v36 = vadd.f32 1.0, %v2868_v13  ;;  %v1658_v23 = vmul.f32 0.5, %v1638_v59  ;;  %v1641_v62 = vadd.f32 %v2567_v44, %v1497_v21  ;;  %v1632_v29 = vpop.f32.mrb[31].mxu1  ;;  %2570 = vmatprep.subr.bf16.mxu0 %v1726_v2  ;;  %v1696_v3 = vmul.f32 %v1680_v19, %v3553_v54  ;;  %2676 = vset.pattern.permute.xlu0 %v2940_v28  ;;  %v1735_v33 = vpop.permute.xlu1 %1734 }
 0x561   :  { %v1699_v61 = vmul.f32 %v1683_v31, %v1651_v12  ;;  %v1656_v22 = vmul.f32 0.5, %v1630_v41  ;;  %v1633_v45 = vadd.f32 %v1632_v29, %v1489_v40  ;;  %2032 = vperm.xlu0 %2676, %v2933_v32   ;;  %v1739_v34 = vpop.permute.xlu0 %1738 }
 0x562   :  { %v1697_v6 = vmul.f32 %v1681_v36, %v1649_v52  ;;  %2877 = vtanh.f32 %v1658_v23  ;;  %v1659_v50 = vmul.f32 0.5, %v1641_v62 }
 0x563   :  { %2879 = vtanh.f32 %v1656_v22  ;;  %v1657_v8 = vmul.f32 0.5, %v1633_v45  ;;  %2571 = vmatpush3.bf16.msra.mxu0 %v1726_v2  ;;  %v1728_v14 = vpack.c.bf16 %v1699_v61, %v1698_v49  ;;  %v2716_v2 = vld [vmem:[%s3630_s3 + $0x138] sm:$0xff]  }
 0x564   :  { %v2870_v10 = vpop.eup %2869  ;;  %2881 = vtanh.f32 %v1659_v50  ;;  %v1727_v11 = vpack.c.bf16 %v1697_v6, %v1696_v3  ;;  %v1743_v18 = vpop.permute.xlu1 %1742 }
 0x565   :  { %v2872_v15 = vpop.eup %2871  ;;  %v1686_v35 = vadd.f32 1.0, %v2870_v10  ;;  %2883 = vtanh.f32 %v1657_v8  ;;  %v1751_v19 = vpop.permute.xlu0 %1750 }
 0x566   :  { %v2874_v58 = vpop.eup %2873  ;;  %v1684_v9 = vadd.f32 1.0, %v2872_v15  ;;  %2572 = vmatprep.subr.bf16.mxu0 %v1727_v11 }
 0x567   :  { %v2876_v12 = vpop.eup %2875  ;;  %v1687_v24 = vadd.f32 1.0, %v2874_v58  ;;  %2573 = vmatpush3.bf16.msra.mxu0 %v1727_v11  ;;  %v1702_v52 = vmul.f32 %v1686_v35, %v3557_v55 }
 0x568   :  { %v1685_v54 = vadd.f32 1.0, %v2876_v12  ;;  %2574 = vmatprep.subr.bf16.mxu0 %v1728_v14  ;;  %v1700_v47 = vmul.f32 %v1684_v9, %v1652_v26  ;;  %v2710_v26 = vld [vmem:[%s3630_s3 + $0x108] sm:$0xff]   ;;  %v1747_v38 = vpop.permute.xlu1 %1746 }
 0x569   :  { %v1703_v17 = vmul.f32 %v1687_v24, %v1655_v63  ;;  %v2714_v63 = vld [vmem:[%s3630_s3 + $0x128] sm:$0xff]   ;;  %v1759_v20 = vpop.permute.xlu0 %1758 }
 0x56a   :  { %v1701_v5 = vmul.f32 %v1685_v54, %v1653_v30  ;;  %v2715_v30 = vld [vmem:[%s3630_s3 + $0x130] sm:$0xff]  }
 0x56b   :  { %2575 = vmatpush3.bf16.msra.mxu0 %v1728_v14  ;;  %v1730_v48 = vpack.c.bf16 %v1703_v17, %v1702_v52 }
 0x56c   :  { %v2878_v60 = vpop.eup %2877  ;;  %v1729_v37 = vpack.c.bf16 %v1701_v5, %v1700_v47  ;;  %v1755_v59 = vpop.permute.xlu1 %1754 }
 0x56d   :  { %v2880_v1 = vpop.eup %2879  ;;  %v1690_v43 = vadd.f32 1.0, %v2878_v60  ;;  %v1767_v45 = vpop.permute.xlu0 %1766 }
 0x56e   :  { %v2882_v39 = vpop.eup %2881  ;;  %v1688_v51 = vadd.f32 1.0, %v2880_v1  ;;  %2576 = vmatprep.subr.bf16.mxu0 %v1729_v37 }
 0x56f   :  { %v2884_v53 = vpop.eup %2883  ;;  %v1691_v16 = vadd.f32 1.0, %v2882_v39  ;;  %2577 = vmatpush3.bf16.msra.mxu0 %v1729_v37  ;;  %v1706_v0 = vmul.f32 %v1690_v43, %v1658_v23 }
 0x570   :  { %v1689_v46 = vadd.f32 1.0, %v2884_v53  ;;  %2578 = vmatprep.subr.bf16.mxu0 %v1730_v48  ;;  %v1704_v55 = vmul.f32 %v1688_v51, %v1656_v22  ;;  %v1763_v41 = vpop.permute.xlu1 %1762 }
 0x571   :  { %v1707_v27 = vmul.f32 %v1691_v16, %v1659_v50  ;;  %v1775_v9 = vpop.permute.xlu0 %1774 }
 0x572   :  { %v1705_v40 = vmul.f32 %v1689_v46, %v1657_v8 }
 0x573   :  { %2579 = vmatpush3.bf16.msra.mxu0 %v1730_v48  ;;  %v1732_v7 = vpack.c.bf16 %v1707_v27, %v1706_v0 }
 0x574   :  { %v1731_v56 = vpack.c.bf16 %v1705_v40, %v1704_v55  ;;  %v1771_v6 = vpop.permute.xlu1 %1770 }
 0x575   :  { %v1783_v53 = vpop.permute.xlu0 %1782 }
 0x576   :  { %2580 = vmatprep.subr.bf16.mxu0 %v1731_v56 }
 0x577   :  { %2581 = vmatpush3.bf16.msra.mxu0 %v1731_v56 }
 0x578   :  { %2582 = vmatprep.subr.bf16.mxu0 %v1732_v7  ;;  %v1779_v52 = vpop.permute.xlu1 %1778 }
 0x57b   :  { %2583 = vmatpush3.bf16.msra.mxu0 %v1732_v7 }
 0x57c   :  { %v1787_v56 = vpop.permute.xlu1 %1786 }
 0x57e   :  { %2585 = vmatmul.mubr.bf16.vlgmr.msra.gmra.mrb[32].mxu0 %v2710_v26 }
 0x57f   :  { %2588 = vmatprep.mubr.bf16.mxu0 %v2711_v25 }
 0x586   :  { %2589 = vmatmul.mubr.bf16.gmra.mrb[36].mxu0 %v2712_v57 }
 0x587   :  { %2592 = vmatprep.mubr.bf16.mxu0 %v2713_v42 }
 0x58e   :  { %2593 = vmatmul.mubr.bf16.gmra.mrb[40].mxu0 %v2714_v63 }
 0x58f   :  { %2596 = vmatprep.mubr.bf16.mxu0 %v2715_v30 }
 0x596   :  { %2597 = vmatmul.mubr.bf16.gmra.mrb[44].mxu0 %v2716_v2 }
 0x651   :  { %v2586_v13 = vpop.f32.mrb[32].mxu0 }
 0x652   :  { %v1888_v21 = vadd.f32 %v2586_v13, %v1743_v18  ;;  %v1879_v31 = vpop.f32.mrb[33].mxu0 }
 0x653   :  { %v1880_v44 = vadd.f32 %v1879_v31, %v1735_v33  ;;  %v2587_v36 = vpop.f32.mrb[34].mxu0 }
 0x654   :  { %v1944_v23 = vmul.f32 0.5, %v1888_v21  ;;  %v1891_v62 = vadd.f32 %v2587_v36, %v1747_v38  ;;  %v1882_v29 = vpop.f32.mrb[35].mxu0 }
 0x655   :  { %v1942_v49 = vmul.f32 0.5, %v1880_v44  ;;  %v1883_v61 = vadd.f32 %v1882_v29, %v1739_v34  ;;  %v1791_v34 = vpop.permute.xlu0 %1790 }
 0x656   :  { %2885 = vtanh.f32 %v1944_v23  ;;  %v1945_v22 = vmul.f32 0.5, %v1891_v62 }
 0x657   :  { %2887 = vtanh.f32 %v1942_v49  ;;  %v1943_v3 = vmul.f32 0.5, %v1883_v61 }
 0x658   :  { %2889 = vtanh.f32 %v1945_v22 }
 0x659   :  { %2891 = vtanh.f32 %v1943_v3  ;;  %v2590_v50 = vpop.f32.mrb[36].mxu0 }
 0x65a   :  { %v1904_v8 = vadd.f32 %v2590_v50, %v1759_v20  ;;  %v1895_v14 = vpop.f32.mrb[37].mxu0 }
 0x65b   :  { %v1896_v10 = vadd.f32 %v1895_v14, %v1751_v19  ;;  %v2591_v11 = vpop.f32.mrb[38].mxu0 }
 0x65c   :  { %v3590_v15 = vmul.f32 0.5, %v1904_v8  ;;  %v1907_v35 = vadd.f32 %v2591_v11, %v1763_v41  ;;  %v1898_v58 = vpop.f32.mrb[39].mxu0  ;;  %v1795_v41 = vpop.permute.xlu1 %1794 }
 0x65d   :  { %v3592_v12 = vmul.f32 0.5, %v1896_v10  ;;  %v1899_v24 = vadd.f32 %v1898_v58, %v1755_v59 }
 0x65e   :  { %2893 = vtanh.f32 %v3590_v15  ;;  %v1949_v54 = vmul.f32 0.5, %v1907_v35 }
 0x65f   :  { %2895 = vtanh.f32 %v3592_v12  ;;  %v1947_v17 = vmul.f32 0.5, %v1899_v24 }
 0x660   :  { %v2886_v47 = vpop.eup %2885  ;;  %2897 = vtanh.f32 %v1949_v54 }
 0x661   :  { %v2888_v5 = vpop.eup %2887  ;;  %v1976_v48 = vadd.f32 1.0, %v2886_v47  ;;  %2899 = vtanh.f32 %v1947_v17  ;;  %v2594_v60 = vpop.f32.mrb[40].mxu0 }
 0x662   :  { %v2890_v37 = vpop.eup %2889  ;;  %v1974_v1 = vadd.f32 1.0, %v2888_v5  ;;  %v1920_v43 = vadd.f32 %v2594_v60, %v1775_v9  ;;  %v1911_v39 = vpop.f32.mrb[41].mxu0 }
 0x663   :  { %v2892_v51 = vpop.eup %2891  ;;  %v1977_v16 = vadd.f32 1.0, %v2890_v37  ;;  %v1912_v46 = vadd.f32 %v1911_v39, %v1767_v45  ;;  %v2595_v0 = vpop.f32.mrb[42].mxu0  ;;  %v1992_v26 = vmul.f32 %v1976_v48, %v1944_v23 }
 0x664   :  { %v1975_v27 = vadd.f32 1.0, %v2892_v51  ;;  %v3596_v55 = vmul.f32 0.5, %v1920_v43  ;;  %v1923_v40 = vadd.f32 %v2595_v0, %v1779_v52  ;;  %v1914_v7 = vpop.f32.mrb[43].mxu0  ;;  %v1990_v63 = vmul.f32 %v1974_v1, %v1942_v49 }
 0x665   :  { %v1993_v25 = vmul.f32 %v1977_v16, %v1945_v22  ;;  %v1950_v57 = vmul.f32 0.5, %v1912_v46  ;;  %v1915_v42 = vadd.f32 %v1914_v7, %v1771_v6 }
 0x666   :  { %v1991_v30 = vmul.f32 %v1975_v27, %v1943_v3  ;;  %2901 = vtanh.f32 %v3596_v55  ;;  %v1953_v2 = vmul.f32 0.5, %v1923_v40 }
 0x667   :  { %2903 = vtanh.f32 %v1950_v57  ;;  %v1951_v4 = vmul.f32 0.5, %v1915_v42  ;;  %v2024_v28 = vpack.c.bf16 %v1993_v25, %v1992_v26  ;;  %v2719_v42 = vld [vmem:[%s3630_s3 + $0x150] sm:$0xff]  }
 0x668   :  { %v2894_v32 = vpop.eup %2893  ;;  %2905 = vtanh.f32 %v1953_v2  ;;  %v2023_v33 = vpack.c.bf16 %v1991_v30, %v1990_v63  ;;  %v2720_v63 = vld [vmem:[%s3630_s3 + $0x158] sm:$0xff]   ;;  %v2721_v30 = vld [vmem:[%s3630_s3 + $0x160] sm:$0xff]  }
 0x669   :  { %v2896_v18 = vpop.eup %2895  ;;  %v1980_v38 = vadd.f32 1.0, %v2894_v32  ;;  %2907 = vtanh.f32 %v1951_v4  ;;  %v2598_v19 = vpop.f32.mrb[44].mxu0 }
 0x66a   :  { %v2898_v59 = vpop.eup %2897  ;;  %v1978_v20 = vadd.f32 1.0, %v2896_v18  ;;  %v1936_v13 = vadd.f32 %v2598_v19, %v1791_v34  ;;  %v1927_v21 = vpop.f32.mrb[45].mxu0  ;;  %2600 = vmatprep.subr.bf16.mxu1 %v2023_v33 }
 0x66b   :  { %v2900_v31 = vpop.eup %2899  ;;  %v1981_v44 = vadd.f32 1.0, %v2898_v59  ;;  %v1928_v36 = vadd.f32 %v1927_v21, %v1783_v53  ;;  %v2599_v23 = vpop.f32.mrb[46].mxu0  ;;  %2601 = vmatpush3.bf16.msra.mxu1 %v2023_v33  ;;  %v1996_v22 = vmul.f32 %v1980_v38, %v3590_v15 }
 0x66c   :  { %v1979_v62 = vadd.f32 1.0, %v2900_v31  ;;  %v1956_v29 = vmul.f32 0.5, %v1936_v13  ;;  %v1939_v49 = vadd.f32 %v2599_v23, %v1795_v41  ;;  %v1930_v61 = vpop.f32.mrb[47].mxu0  ;;  %2602 = vmatprep.subr.bf16.mxu1 %v2024_v28  ;;  %v1994_v50 = vmul.f32 %v1978_v20, %v3592_v12  ;;  %v2033_v32 = vpop.permute.xlu0 %2032 }
 0x66d   :  { %v1997_v45 = vmul.f32 %v1981_v44, %v1949_v54  ;;  %v1954_v3 = vmul.f32 0.5, %v1928_v36  ;;  %v1931_v6 = vadd.f32 %v1930_v61, %v1787_v56 }
 0x66e   :  { %v1995_v8 = vmul.f32 %v1979_v62, %v1947_v17  ;;  %2909 = vtanh.f32 %v1956_v29  ;;  %v1957_v14 = vmul.f32 0.5, %v1939_v49 }
 0x66f   :  { %2911 = vtanh.f32 %v1954_v3  ;;  %v1955_v10 = vmul.f32 0.5, %v1931_v6  ;;  %2603 = vmatpush3.bf16.msra.mxu1 %v2024_v28  ;;  %v2026_v11 = vpack.c.bf16 %v1997_v45, %v1996_v22  ;;  %v2724_v28 = vld [vmem:[%s3630_s3 + $0x178] sm:$0xff]  }
 0x670   :  { %v2902_v35 = vpop.eup %2901  ;;  %2913 = vtanh.f32 %v1957_v14  ;;  %v2025_v58 = vpack.c.bf16 %v1995_v8, %v1994_v50 }
 0x671   :  { %v2904_v9 = vpop.eup %2903  ;;  %v1984_v24 = vadd.f32 1.0, %v2902_v35  ;;  %2915 = vtanh.f32 %v1955_v10 }
 0x672   :  { %v2906_v52 = vpop.eup %2905  ;;  %v1982_v15 = vadd.f32 1.0, %v2904_v9  ;;  %2604 = vmatprep.subr.bf16.mxu1 %v2025_v58 }
 0x673   :  { %v2908_v54 = vpop.eup %2907  ;;  %v1985_v47 = vadd.f32 1.0, %v2906_v52  ;;  %2605 = vmatpush3.bf16.msra.mxu1 %v2025_v58  ;;  %v2000_v17 = vmul.f32 %v1984_v24, %v3596_v55 }
 0x674   :  { %v1983_v12 = vadd.f32 1.0, %v2908_v54  ;;  %2606 = vmatprep.subr.bf16.mxu1 %v2026_v11  ;;  %v1998_v48 = vmul.f32 %v1982_v15, %v1950_v57  ;;  %v2718_v57 = vld [vmem:[%s3630_s3 + $0x148] sm:$0xff]  }
 0x675   :  { %v2001_v5 = vmul.f32 %v1985_v47, %v1953_v2  ;;  %v2722_v2 = vld [vmem:[%s3630_s3 + $0x168] sm:$0xff]  }
 0x676   :  { %v1999_v60 = vmul.f32 %v1983_v12, %v1951_v4  ;;  %v2723_v4 = vld [vmem:[%s3630_s3 + $0x170] sm:$0xff]  }
 0x677   :  { %2607 = vmatpush3.bf16.msra.mxu1 %v2026_v11  ;;  %v2028_v37 = vpack.c.bf16 %v2001_v5, %v2000_v17 }
 0x678   :  { %v2910_v1 = vpop.eup %2909  ;;  %v2027_v43 = vpack.c.bf16 %v1999_v60, %v1998_v48 }
 0x679   :  { %v2912_v39 = vpop.eup %2911  ;;  %v1988_v51 = vadd.f32 1.0, %v2910_v1 }
 0x67a   :  { %v2914_v53 = vpop.eup %2913  ;;  %v1986_v16 = vadd.f32 1.0, %v2912_v39  ;;  %2608 = vmatprep.subr.bf16.mxu1 %v2027_v43 }
 0x67b   :  { %v2916_v46 = vpop.eup %2915  ;;  %v1989_v0 = vadd.f32 1.0, %v2914_v53  ;;  %2609 = vmatpush3.bf16.msra.mxu1 %v2027_v43  ;;  %v2004_v40 = vmul.f32 %v1988_v51, %v1956_v29 }
 0x67c   :  { %v1987_v27 = vadd.f32 1.0, %v2916_v46  ;;  %2610 = vmatprep.subr.bf16.mxu1 %v2028_v37  ;;  %v2002_v55 = vmul.f32 %v1986_v16, %v1954_v3 }
 0x67d   :  { %v2005_v7 = vmul.f32 %v1989_v0, %v1957_v14 }
 0x67e   :  { %v2003_v56 = vmul.f32 %v1987_v27, %v1955_v10 }
 0x67f   :  { %2611 = vmatpush3.bf16.msra.mxu1 %v2028_v37  ;;  %v2030_v26 = vpack.c.bf16 %v2005_v7, %v2004_v40 }
 0x680   :  { %v2029_v25 = vpack.c.bf16 %v2003_v56, %v2002_v55 }
 0x682   :  { %2612 = vmatprep.subr.bf16.mxu1 %v2029_v25 }
 0x683   :  { %2613 = vmatpush3.bf16.msra.mxu1 %v2029_v25 }
 0x684   :  { %2614 = vmatprep.subr.bf16.mxu1 %v2030_v26 }
 0x687   :  { %2615 = vmatpush3.bf16.msra.mxu1 %v2030_v26 }
 0x68a   :  { %2617 = vmatmul.mubr.bf16.vlgmr.msra.gmra.mrb[32].mxu1 %v2718_v57 }
 0x68b   :  { %2620 = vmatprep.mubr.bf16.mxu1 %v2719_v42 }
 0x692   :  { %2621 = vmatmul.mubr.bf16.gmra.mrb[36].mxu1 %v2720_v63 }
 0x693   :  { %2624 = vmatprep.mubr.bf16.mxu1 %v2721_v30 }
 0x69a   :  { %2625 = vmatmul.mubr.bf16.gmra.mrb[40].mxu1 %v2722_v2 }
 0x69b   :  { %2628 = vmatprep.mubr.bf16.mxu1 %v2723_v4 }
 0x6a2   :  { %2629 = vmatmul.mubr.bf16.gmra.mrb[44].mxu1 %v2724_v28 }
 0x75d   :  { %v2618_v33 = vpop.f32.mrb[32].mxu1 }
 0x75e   :  { %v2162_v18 = vpop.f32.mrb[33].mxu1 }
 0x75f   :  { %v2163_v34 = vadd.f32 %v2162_v18, %v2033_v32  ;;  %v2619_v38 = vpop.f32.mrb[34].mxu1 }
 0x760   :  { %v2165_v19 = vpop.f32.mrb[35].mxu1 }
 0x761   :  { %2210 = vst [vmem:[%s3631_s5] sm:$0x3] %v2163_v34 }
 0x765   :  { %v2622_v59 = vpop.f32.mrb[36].mxu1 }
 0x766   :  { %v2175_v20 = vpop.f32.mrb[37].mxu1 }
 0x767   :  { %v2623_v13 = vpop.f32.mrb[38].mxu1 }
 0x768   :  { %v2177_v21 = vpop.f32.mrb[39].mxu1 }
 0x76d   :  { %v2626_v31 = vpop.f32.mrb[40].mxu1 }
 0x76e   :  { %v2187_v41 = vpop.f32.mrb[41].mxu1 }
 0x76f   :  { %v2627_v44 = vpop.f32.mrb[42].mxu1 }
 0x770   :  { %v2189_v36 = vpop.f32.mrb[43].mxu1 }
 0x775   :  { %v2630_v23 = vpop.f32.mrb[44].mxu1 }
 0x776   :  { %v2199_v62 = vpop.f32.mrb[45].mxu1 }
 0x777   :  { %v2631_v29 = vpop.f32.mrb[46].mxu1 }
 0x778   :  { %v2201_v49 = vpop.f32.mrb[47].mxu1 }

</bundles_post_ra>
